<compile_context>
chip_gen: v7x
topology: tpu7x:2x2x1
jax: 0.10.0
libtpu: 0.0.40
codegen_flags: <defaults>
</compile_context>

<pallas_src>
import numpy as np
import jax
import jax.numpy as jnp
from jax.experimental import pallas as pl
from jax.experimental.pallas import tpu as pltpu


# ----------------------------------------------------------------------------
# Architecture / layout constants (grayscale 16x16 input; CNN guess, see TODO)
# ----------------------------------------------------------------------------
H0 = W0 = 16          # input spatial size
CIN = 1               # input channels (grayscale, module docstring [C, H, W])
C1, C2 = 8, 16        # conv channel counts
KK = 3                # conv kernel size (padding = 1)

WP1 = W0 + 2                       # padded width, layer-1 "wide" layout   (18)
LFLAT1 = (H0 + 3) * WP1            # flattened padded input length         (342)
N1 = H0 * WP1                      # conv1 wide columns per image          (288)
NP1 = (H0 - 2) * WP1 + (W0 - 1)    # pool1 candidate columns               (267)

H1 = W1 = H0 // 2                  # spatial after pool1                   (8)
WP2 = W1 + 2                       # padded width, layer-2 wide layout     (10)
LFLAT2 = (H1 + 3) * WP2            # flattened padded pooled-map length    (110)
LFLAT2A = 128                      # ... padded to one full vreg of lanes  (128)
N2 = H1 * WP2                      # conv2 wide columns per image          (80)
NP2 = (H1 - 2) * WP2 + (W1 - 1)    # pool2 candidate columns               (67)
NA2 = 128                          # 128-aligned per-image lane stride, layer 2

HF = WF = H1 // 2                  # final feature spatial size            (4)


# ----------------------------------------------------------------------------
# 0/1 selection matrices (built once in numpy; constants for the kernel).
# They simultaneously 2x-downsample, zero-pad and re-flatten a pooled map.
# Rows that do not correspond to a valid 2x2 window top-left are all-zero, so
# "wrap"/junk candidate columns (row ends, guard lanes) are multiplied by an
# exact 0 and can never contaminate the result (column-validity invariant).
# ----------------------------------------------------------------------------
def _pool_select_matrix():
    s = np.zeros((NP1, LFLAT2A), np.float32)     # output dim padded 110 -> 128
    for yo in range(H1):
        for xo in range(W1):
            p = (2 * yo) * WP1 + 2 * xo          # top-left of 2x2 window
            q = (yo + 1) * WP2 + (xo + 1)        # padded position in next map
            s[p, q] = 1.0
    return s


def _final_select_matrix():
    s = np.zeros((NP2, HF * WF), np.float32)
    for yo in range(HF):
        for xo in range(WF):
            s[(2 * yo) * WP2 + 2 * xo, yo * WF + xo] = 1.0
    return s


# ----------------------------------------------------------------------------
# The fused Pallas kernel.
# ----------------------------------------------------------------------------
def _pool2x2(c, base, wp, n_cand):
    """2x2 max-pool candidates of a 'wide' flattened map held in registers.

    Column p of the result = max of columns {p, p+1, p+wp, p+wp+1} of c[:, base:].
    Only candidates that are true window top-lefts are selected downstream.
    """
    return jnp.maximum(
        jnp.maximum(c[:, base:base + n_cand],
                    c[:, base + 1:base + 1 + n_cand]),
        jnp.maximum(c[:, base + wp:base + wp + n_cand],
                    c[:, base + wp + 1:base + wp + 1 + n_cand]))


def _snn_fused_kernel(x_ref, w1_ref, b1_ref, w2_ref, b2_ref, s1_ref, s2_ref,
                      out_ref, p2_ref):
    # Zero the conv-2 patch buffer once so its 128-aligned guard lanes
    # ([80:128) and [208:256)) are well-defined (finite) everywhere.
    p2_ref[...] = jnp.zeros_like(p2_ref)

    x = x_ref[...]            # (2, LFLAT1): row 0 = target, row 1 = environment
    w1 = w1_ref[...]          # (C1, 9)
    b1 = b1_ref[...]          # (C1, 1)

    # ---- layer 1: 3x3 conv (pad=1) as a 9-tap VPU multiply-accumulate ------
    # (M=8 / K=9 is a terrible MXU shape; broadcast-MACs over ~3-vreg rows are
    #  far cheaper than building an im2col patch buffer.)
    acc0 = jnp.zeros((C1, N1), jnp.float32)
    acc1 = jnp.zeros((C1, N1), jnp.float32)
    for t in range(KK * KK):
        off = (t // KK) * WP1 + (t % KK)
        win = x[:, off:off + N1]                   # (2, N1), both images at once
        wt = w1[:, t:t + 1]                        # (C1, 1)
        acc0 = acc0 + wt * win[0:1, :]
        acc1 = acc1 + wt * win[1:2, :]
    c1_0 = jnp.maximum(acc0 + b1, 0.0)             # (C1, N1)  target
    c1_1 = jnp.maximum(acc1 + b1, 0.0)             # (C1, N1)  environment

    # ---- layer 1: fused 2x2 max-pool + re-pad/re-flatten, ONE selection GEMM
    # Both images stacked on the sublane axis -> a single (16, 267)x(267, 128)
    # matmul; result rows [0:8] = target channels, [8:16] = environment.
    lhs1 = jnp.concatenate([_pool2x2(c1_0, 0, WP1, NP1),
                            _pool2x2(c1_1, 0, WP1, NP1)], axis=0)
    n1 = jnp.dot(lhs1, s1_ref[...],
                 preferred_element_type=jnp.float32)           # (2*C1, 128)

    # ---- layer 2: 3x3 conv (pad=1) as one K=72 GEMM over tap-stacked patches
    # Per-image lane bases in p2 are 128-aligned (image 1 starts at lane 128).
    for t in range(KK * KK):
        off = (t // KK) * WP2 + (t % KK)
        for img in range(2):
            p2_ref[t * C1:(t + 1) * C1, img * NA2:img * NA2 + N2] = \
                n1[img * C1:(img + 1) * C1, off:off + N2]
    acc2 = jnp.dot(w2_ref[...], p2_ref[...],
                   preferred_element_type=jnp.float32)         # (C2, 2*NA2)
    c2 = jnp.maximum(acc2 + b2_ref[...], 0.0)

    # ---- layer 2: pool + final selection GEMM + feature difference ----------
    # Again both images stacked on sublanes -> one (32, 67)x(67, 16) matmul.
    lhs2 = jnp.concatenate([_pool2x2(c2, 0, WP2, NP2),
                            _pool2x2(c2, NA2, WP2, NP2)], axis=0)
    feats = jnp.dot(lhs2, s2_ref[...],
                    preferred_element_type=jnp.float32)        # (2*C2, 16)
    out_ref[...] = feats[:C2, :] - feats[C2:, :]               # target - env


# ----------------------------------------------------------------------------
# Wrapper
# ----------------------------------------------------------------------------
_VMEM = pl.BlockSpec(memory_space=pltpu.MemorySpace.VMEM)


def _flatten_pad(img):
    # (CIN, H0, W0) -> zero-pad to (H0+3, W0+2) -> flat (1, LFLAT1).
    # Extra bottom rows are zero slack so all in-kernel tap windows stay
    # in-bounds; conv semantics only use the standard 1-pixel zero pad.
    xp = jnp.pad(img[0], ((1, 2), (1, 1)))
    return xp.reshape(1, LFLAT1)


@jax.jit
def snn_forward(image_environement, image_target, params):
    """SNN.forward with no precomputed target:
       returns CNN(image_target) - CNN(image_environement), shape (C2, 4, 4)."""
    x = jnp.concatenate([_flatten_pad(image_target),
                         _flatten_pad(image_environement)], axis=0)  # (2, 342)
    out = pl.pallas_call(
        _snn_fused_kernel,
        out_shape=jax.ShapeDtypeStruct((C2, HF * WF), jnp.float32),
        in_specs=[_VMEM] * 7,
        out_specs=_VMEM,
        scratch_shapes=[
            pltpu.VMEM((KK * KK * C1, 2 * NA2), jnp.float32),   # conv2 patches
        ],
    )(x, params["w1"], params["b1"], params["w2"], params["b2"],
      params["s1"], params["s2"])
    return out.reshape(C2, HF, WF)


# ----------------------------------------------------------------------------
# Parameters
# ----------------------------------------------------------------------------
def _init_raw_params(key):
    k1, k2, k3, k4 = jax.random.split(key, 4)
    w1 = 0.1 * jax.random.normal(k1, (C1, CIN, KK, KK), jnp.float32)
    b1 = 0.1 * jax.random.normal(k2, (C1,), jnp.float32)
    w2 = 0.1 * jax.random.normal(k3, (C2, C1, KK, KK), jnp.float32)
    b2 = 0.1 * jax.random.normal(k4, (C2,), jnp.float32)
    return {"w1": w1, "b1": b1, "w2": w2, "b2": b2}


def _pack_kernel_params(raw):
    # conv1 tap matrix: (C1, 9), tap index kh*3 + kw (CIN == 1).
    w1 = raw["w1"].reshape(C1, CIN * KK * KK)
    # conv2 GEMM matrix: tap-major / channel-minor (row = t*C1 + c) to match
    # the in-kernel patch stacking: (C2,C1,3,3) -> (C2,3,3,C1) -> (C2,72).
    w2 = raw["w2"].transpose(0, 2, 3, 1).reshape(C2, KK * KK * C1)
    return {
        "w1": w1, "b1": raw["b1"].reshape(C1, 1),
        "w2": w2, "b2": raw["b2"].reshape(C2, 1),
        "s1": jnp.asarray(_pool_select_matrix()),   # (267, 128)
        "s2": jnp.asarray(_final_select_matrix()),  # (67, 16)
    }


# ----------------------------------------------------------------------------
# Main
# ----------------------------------------------------------------------------
if __name__ == "__main__":
    key = jax.random.PRNGKey(0)
    k_env, k_tgt, k_par = jax.random.split(key, 3)

    img_env = jax.random.uniform(k_env, (CIN, H0, W0), jnp.float32)
    img_tgt = jax.random.uniform(k_tgt, (CIN, H0, W0), jnp.float32)
    raw = _init_raw_params(k_par)
    params = _pack_kernel_params(raw)

    out = snn_forward(img_env, img_tgt, params)
    out = jax.block_until_ready(out)

    assert out.shape == (C2, HF, WF), out.shape
    assert out.dtype == jnp.float32

    # Plain-JAX/XLA reference of the same CNN (conv3x3 pad=1 + ReLU + pool, x2)
    def ref_conv(x, w, b):
        y = jax.lax.conv_general_dilated(
            x[None], w, (1, 1), ((1, 1), (1, 1)),
            dimension_numbers=("NCHW", "OIHW", "NCHW"),
            precision=jax.lax.Precision.HIGHEST)[0]
        return jnp.maximum(y + b[:, None, None], 0.0)

    def ref_pool(x):
        c, h, w = x.shape
        return x.reshape(c, h // 2, 2, w // 2, 2).max(axis=(2, 4))

    def ref_cnn(x):
        y = ref_pool(ref_conv(x, raw["w1"], raw["b1"]))
        y = ref_pool(ref_conv(y, raw["w2"], raw["b2"]))
        return y

    ref = ref_cnn(img_tgt) - ref_cnn(img_env)
    err = float(jnp.max(jnp.abs(out - ref)))
    assert jnp.allclose(out, ref, atol=1e-3, rtol=1e-3), err

    print("KERNEL_OK")
</pallas_src>

<mosaic_0001>
module attributes {stable_mosaic.version = 11 : i64} {
  func.func @_snn_fused_kernel(%arg0: memref<2x342xf32, #tpu.memory_space<vmem>>, %arg1: memref<8x9xf32, #tpu.memory_space<vmem>>, %arg2: memref<8x1xf32, #tpu.memory_space<vmem>>, %arg3: memref<16x72xf32, #tpu.memory_space<vmem>>, %arg4: memref<16x1xf32, #tpu.memory_space<vmem>>, %arg5: memref<267x128xf32, #tpu.memory_space<vmem>>, %arg6: memref<67x16xf32, #tpu.memory_space<vmem>>, %arg7: memref<16x16xf32, #tpu.memory_space<vmem>>, %arg8: memref<72x256xf32, #tpu.memory_space<vmem>>) attributes {dimension_semantics = [], scalar_prefetch = 0 : i64, scratch_operands = 1 : i64, tpu.core_type = #tpu.core_type<tc>} {
    %cst = arith.constant 0.000000e+00 : f32
    %0 = vector.broadcast %cst : f32 to vector<72x256xf32>
    %c0 = arith.constant 0 : index
    %c0_0 = arith.constant 0 : index
    %1 = vector.load %arg8[%c0, %c0_0] : memref<72x256xf32, #tpu.memory_space<vmem>>, vector<72x256xf32>
    tpu.vector_store %arg8[%c0, %c0_0], %0 {strides = array<i32>} : memref<72x256xf32, #tpu.memory_space<vmem>>, vector<72x256xf32>,
    %c0_1 = arith.constant 0 : index
    %c0_2 = arith.constant 0 : index
    %2 = vector.load %arg0[%c0_1, %c0_2] : memref<2x342xf32, #tpu.memory_space<vmem>>, vector<2x342xf32>
    %c0_3 = arith.constant 0 : index
    %c0_4 = arith.constant 0 : index
    %3 = vector.load %arg1[%c0_3, %c0_4] : memref<8x9xf32, #tpu.memory_space<vmem>>, vector<8x9xf32>
    %c0_5 = arith.constant 0 : index
    %c0_6 = arith.constant 0 : index
    %4 = vector.load %arg2[%c0_5, %c0_6] : memref<8x1xf32, #tpu.memory_space<vmem>>, vector<8x1xf32>
    %cst_7 = arith.constant 0.000000e+00 : f32
    %5 = vector.broadcast %cst_7 : f32 to vector<8x288xf32>
    %cst_8 = arith.constant 0.000000e+00 : f32
    %6 = vector.broadcast %cst_8 : f32 to vector<8x288xf32>
    %7 = vector.extract_strided_slice %2 {offsets = [0, 0], sizes = [2, 288], strides = [1, 1]} : vector<2x342xf32> to vector<2x288xf32>
    %8 = vector.extract_strided_slice %3 {offsets = [0, 0], sizes = [8, 1], strides = [1, 1]} : vector<8x9xf32> to vector<8x1xf32>
    %9 = vector.extract_strided_slice %7 {offsets = [0, 0], sizes = [1, 288], strides = [1, 1]} : vector<2x288xf32> to vector<1x288xf32>
    %10 = vector.broadcast %8 : vector<8x1xf32> to vector<8x288xf32>
    %11 = vector.broadcast %9 : vector<1x288xf32> to vector<8x288xf32>
    %12 = arith.mulf %10, %11 : vector<8x288xf32>
    %13 = arith.addf %5, %12 : vector<8x288xf32>
    %14 = vector.extract_strided_slice %7 {offsets = [1, 0], sizes = [1, 288], strides = [1, 1]} : vector<2x288xf32> to vector<1x288xf32>
    %15 = vector.broadcast %8 : vector<8x1xf32> to vector<8x288xf32>
    %16 = vector.broadcast %14 : vector<1x288xf32> to vector<8x288xf32>
    %17 = arith.mulf %15, %16 : vector<8x288xf32>
    %18 = arith.addf %6, %17 : vector<8x288xf32>
    %19 = vector.extract_strided_slice %2 {offsets = [0, 1], sizes = [2, 288], strides = [1, 1]} : vector<2x342xf32> to vector<2x288xf32>
    %20 = vector.extract_strided_slice %3 {offsets = [0, 1], sizes = [8, 1], strides = [1, 1]} : vector<8x9xf32> to vector<8x1xf32>
    %21 = vector.extract_strided_slice %19 {offsets = [0, 0], sizes = [1, 288], strides = [1, 1]} : vector<2x288xf32> to vector<1x288xf32>
    %22 = vector.broadcast %20 : vector<8x1xf32> to vector<8x288xf32>
    %23 = vector.broadcast %21 : vector<1x288xf32> to vector<8x288xf32>
    %24 = arith.mulf %22, %23 : vector<8x288xf32>
    %25 = arith.addf %13, %24 : vector<8x288xf32>
    %26 = vector.extract_strided_slice %19 {offsets = [1, 0], sizes = [1, 288], strides = [1, 1]} : vector<2x288xf32> to vector<1x288xf32>
    %27 = vector.broadcast %20 : vector<8x1xf32> to vector<8x288xf32>
    %28 = vector.broadcast %26 : vector<1x288xf32> to vector<8x288xf32>
    %29 = arith.mulf %27, %28 : vector<8x288xf32>
    %30 = arith.addf %18, %29 : vector<8x288xf32>
    %31 = vector.extract_strided_slice %2 {offsets = [0, 2], sizes = [2, 288], strides = [1, 1]} : vector<2x342xf32> to vector<2x288xf32>
    %32 = vector.extract_strided_slice %3 {offsets = [0, 2], sizes = [8, 1], strides = [1, 1]} : vector<8x9xf32> to vector<8x1xf32>
    %33 = vector.extract_strided_slice %31 {offsets = [0, 0], sizes = [1, 288], strides = [1, 1]} : vector<2x288xf32> to vector<1x288xf32>
    %34 = vector.broadcast %32 : vector<8x1xf32> to vector<8x288xf32>
    %35 = vector.broadcast %33 : vector<1x288xf32> to vector<8x288xf32>
    %36 = arith.mulf %34, %35 : vector<8x288xf32>
    %37 = arith.addf %25, %36 : vector<8x288xf32>
    %38 = vector.extract_strided_slice %31 {offsets = [1, 0], sizes = [1, 288], strides = [1, 1]} : vector<2x288xf32> to vector<1x288xf32>
    %39 = vector.broadcast %32 : vector<8x1xf32> to vector<8x288xf32>
    %40 = vector.broadcast %38 : vector<1x288xf32> to vector<8x288xf32>
    %41 = arith.mulf %39, %40 : vector<8x288xf32>
    %42 = arith.addf %30, %41 : vector<8x288xf32>
    %43 = vector.extract_strided_slice %2 {offsets = [0, 18], sizes = [2, 288], strides = [1, 1]} : vector<2x342xf32> to vector<2x288xf32>
    %44 = vector.extract_strided_slice %3 {offsets = [0, 3], sizes = [8, 1], strides = [1, 1]} : vector<8x9xf32> to vector<8x1xf32>
    %45 = vector.extract_strided_slice %43 {offsets = [0, 0], sizes = [1, 288], strides = [1, 1]} : vector<2x288xf32> to vector<1x288xf32>
    %46 = vector.broadcast %44 : vector<8x1xf32> to vector<8x288xf32>
    %47 = vector.broadcast %45 : vector<1x288xf32> to vector<8x288xf32>
    %48 = arith.mulf %46, %47 : vector<8x288xf32>
    %49 = arith.addf %37, %48 : vector<8x288xf32>
    %50 = vector.extract_strided_slice %43 {offsets = [1, 0], sizes = [1, 288], strides = [1, 1]} : vector<2x288xf32> to vector<1x288xf32>
    %51 = vector.broadcast %44 : vector<8x1xf32> to vector<8x288xf32>
    %52 = vector.broadcast %50 : vector<1x288xf32> to vector<8x288xf32>
    %53 = arith.mulf %51, %52 : vector<8x288xf32>
    %54 = arith.addf %42, %53 : vector<8x288xf32>
    %55 = vector.extract_strided_slice %2 {offsets = [0, 19], sizes = [2, 288], strides = [1, 1]} : vector<2x342xf32> to vector<2x288xf32>
    %56 = vector.extract_strided_slice %3 {offsets = [0, 4], sizes = [8, 1], strides = [1, 1]} : vector<8x9xf32> to vector<8x1xf32>
    %57 = vector.extract_strided_slice %55 {offsets = [0, 0], sizes = [1, 288], strides = [1, 1]} : vector<2x288xf32> to vector<1x288xf32>
    %58 = vector.broadcast %56 : vector<8x1xf32> to vector<8x288xf32>
    %59 = vector.broadcast %57 : vector<1x288xf32> to vector<8x288xf32>
    %60 = arith.mulf %58, %59 : vector<8x288xf32>
    %61 = arith.addf %49, %60 : vector<8x288xf32>
    %62 = vector.extract_strided_slice %55 {offsets = [1, 0], sizes = [1, 288], strides = [1, 1]} : vector<2x288xf32> to vector<1x288xf32>
    %63 = vector.broadcast %56 : vector<8x1xf32> to vector<8x288xf32>
    %64 = vector.broadcast %62 : vector<1x288xf32> to vector<8x288xf32>
    %65 = arith.mulf %63, %64 : vector<8x288xf32>
    %66 = arith.addf %54, %65 : vector<8x288xf32>
    %67 = vector.extract_strided_slice %2 {offsets = [0, 20], sizes = [2, 288], strides = [1, 1]} : vector<2x342xf32> to vector<2x288xf32>
    %68 = vector.extract_strided_slice %3 {offsets = [0, 5], sizes = [8, 1], strides = [1, 1]} : vector<8x9xf32> to vector<8x1xf32>
    %69 = vector.extract_strided_slice %67 {offsets = [0, 0], sizes = [1, 288], strides = [1, 1]} : vector<2x288xf32> to vector<1x288xf32>
    %70 = vector.broadcast %68 : vector<8x1xf32> to vector<8x288xf32>
    %71 = vector.broadcast %69 : vector<1x288xf32> to vector<8x288xf32>
    %72 = arith.mulf %70, %71 : vector<8x288xf32>
    %73 = arith.addf %61, %72 : vector<8x288xf32>
    %74 = vector.extract_strided_slice %67 {offsets = [1, 0], sizes = [1, 288], strides = [1, 1]} : vector<2x288xf32> to vector<1x288xf32>
    %75 = vector.broadcast %68 : vector<8x1xf32> to vector<8x288xf32>
    %76 = vector.broadcast %74 : vector<1x288xf32> to vector<8x288xf32>
    %77 = arith.mulf %75, %76 : vector<8x288xf32>
    %78 = arith.addf %66, %77 : vector<8x288xf32>
    %79 = vector.extract_strided_slice %2 {offsets = [0, 36], sizes = [2, 288], strides = [1, 1]} : vector<2x342xf32> to vector<2x288xf32>
    %80 = vector.extract_strided_slice %3 {offsets = [0, 6], sizes = [8, 1], strides = [1, 1]} : vector<8x9xf32> to vector<8x1xf32>
    %81 = vector.extract_strided_slice %79 {offsets = [0, 0], sizes = [1, 288], strides = [1, 1]} : vector<2x288xf32> to vector<1x288xf32>
    %82 = vector.broadcast %80 : vector<8x1xf32> to vector<8x288xf32>
    %83 = vector.broadcast %81 : vector<1x288xf32> to vector<8x288xf32>
    %84 = arith.mulf %82, %83 : vector<8x288xf32>
    %85 = arith.addf %73, %84 : vector<8x288xf32>
    %86 = vector.extract_strided_slice %79 {offsets = [1, 0], sizes = [1, 288], strides = [1, 1]} : vector<2x288xf32> to vector<1x288xf32>
    %87 = vector.broadcast %80 : vector<8x1xf32> to vector<8x288xf32>
    %88 = vector.broadcast %86 : vector<1x288xf32> to vector<8x288xf32>
    %89 = arith.mulf %87, %88 : vector<8x288xf32>
    %90 = arith.addf %78, %89 : vector<8x288xf32>
    %91 = vector.extract_strided_slice %2 {offsets = [0, 37], sizes = [2, 288], strides = [1, 1]} : vector<2x342xf32> to vector<2x288xf32>
    %92 = vector.extract_strided_slice %3 {offsets = [0, 7], sizes = [8, 1], strides = [1, 1]} : vector<8x9xf32> to vector<8x1xf32>
    %93 = vector.extract_strided_slice %91 {offsets = [0, 0], sizes = [1, 288], strides = [1, 1]} : vector<2x288xf32> to vector<1x288xf32>
    %94 = vector.broadcast %92 : vector<8x1xf32> to vector<8x288xf32>
    %95 = vector.broadcast %93 : vector<1x288xf32> to vector<8x288xf32>
    %96 = arith.mulf %94, %95 : vector<8x288xf32>
    %97 = arith.addf %85, %96 : vector<8x288xf32>
    %98 = vector.extract_strided_slice %91 {offsets = [1, 0], sizes = [1, 288], strides = [1, 1]} : vector<2x288xf32> to vector<1x288xf32>
    %99 = vector.broadcast %92 : vector<8x1xf32> to vector<8x288xf32>
    %100 = vector.broadcast %98 : vector<1x288xf32> to vector<8x288xf32>
    %101 = arith.mulf %99, %100 : vector<8x288xf32>
    %102 = arith.addf %90, %101 : vector<8x288xf32>
    %103 = vector.extract_strided_slice %2 {offsets = [0, 38], sizes = [2, 288], strides = [1, 1]} : vector<2x342xf32> to vector<2x288xf32>
    %104 = vector.extract_strided_slice %3 {offsets = [0, 8], sizes = [8, 1], strides = [1, 1]} : vector<8x9xf32> to vector<8x1xf32>
    %105 = vector.extract_strided_slice %103 {offsets = [0, 0], sizes = [1, 288], strides = [1, 1]} : vector<2x288xf32> to vector<1x288xf32>
    %106 = vector.broadcast %104 : vector<8x1xf32> to vector<8x288xf32>
    %107 = vector.broadcast %105 : vector<1x288xf32> to vector<8x288xf32>
    %108 = arith.mulf %106, %107 : vector<8x288xf32>
    %109 = arith.addf %97, %108 : vector<8x288xf32>
    %110 = vector.extract_strided_slice %103 {offsets = [1, 0], sizes = [1, 288], strides = [1, 1]} : vector<2x288xf32> to vector<1x288xf32>
    %111 = vector.broadcast %104 : vector<8x1xf32> to vector<8x288xf32>
    %112 = vector.broadcast %110 : vector<1x288xf32> to vector<8x288xf32>
    %113 = arith.mulf %111, %112 : vector<8x288xf32>
    %114 = arith.addf %102, %113 : vector<8x288xf32>
    %115 = vector.broadcast %4 : vector<8x1xf32> to vector<8x288xf32>
    %116 = arith.addf %109, %115 : vector<8x288xf32>
    %cst_9 = arith.constant 0.000000e+00 : f32
    %117 = vector.broadcast %cst_9 : f32 to vector<8x288xf32>
    %118 = arith.maximumf %116, %117 : vector<8x288xf32>
    %119 = vector.broadcast %4 : vector<8x1xf32> to vector<8x288xf32>
    %120 = arith.addf %114, %119 : vector<8x288xf32>
    %cst_10 = arith.constant 0.000000e+00 : f32
    %121 = vector.broadcast %cst_10 : f32 to vector<8x288xf32>
    %122 = arith.maximumf %120, %121 : vector<8x288xf32>
    %123 = vector.extract_strided_slice %118 {offsets = [0, 0], sizes = [8, 267], strides = [1, 1]} : vector<8x288xf32> to vector<8x267xf32>
    %124 = vector.extract_strided_slice %118 {offsets = [0, 1], sizes = [8, 267], strides = [1, 1]} : vector<8x288xf32> to vector<8x267xf32>
    %125 = arith.maximumf %123, %124 : vector<8x267xf32>
    %126 = vector.extract_strided_slice %118 {offsets = [0, 18], sizes = [8, 267], strides = [1, 1]} : vector<8x288xf32> to vector<8x267xf32>
    %127 = vector.extract_strided_slice %118 {offsets = [0, 19], sizes = [8, 267], strides = [1, 1]} : vector<8x288xf32> to vector<8x267xf32>
    %128 = arith.maximumf %126, %127 : vector<8x267xf32>
    %129 = arith.maximumf %125, %128 : vector<8x267xf32>
    %130 = vector.extract_strided_slice %122 {offsets = [0, 0], sizes = [8, 267], strides = [1, 1]} : vector<8x288xf32> to vector<8x267xf32>
    %131 = vector.extract_strided_slice %122 {offsets = [0, 1], sizes = [8, 267], strides = [1, 1]} : vector<8x288xf32> to vector<8x267xf32>
    %132 = arith.maximumf %130, %131 : vector<8x267xf32>
    %133 = vector.extract_strided_slice %122 {offsets = [0, 18], sizes = [8, 267], strides = [1, 1]} : vector<8x288xf32> to vector<8x267xf32>
    %134 = vector.extract_strided_slice %122 {offsets = [0, 19], sizes = [8, 267], strides = [1, 1]} : vector<8x288xf32> to vector<8x267xf32>
    %135 = arith.maximumf %133, %134 : vector<8x267xf32>
    %136 = arith.maximumf %132, %135 : vector<8x267xf32>
    %137 = tpu.concatenate %129, %136 in 0 : vector<8x267xf32>, vector<8x267xf32> -> vector<16x267xf32>
    %c0_11 = arith.constant 0 : index
    %c0_12 = arith.constant 0 : index
    %138 = vector.load %arg5[%c0_11, %c0_12] : memref<267x128xf32, #tpu.memory_space<vmem>>, vector<267x128xf32>
    %cst_13 = arith.constant dense<0.000000e+00> : vector<16x128xf32>
    %139 = tpu.matmul %137, %138, %cst_13 {dimension_numbers = #tpu.dot_dimension_numbers<[1], [0], [0], [1], [0, 0, 1, 1], [], []>} : vector<16x267xf32>, vector<267x128xf32>, vector<16x128xf32> -> vector<16x128xf32>
    %140 = vector.extract_strided_slice %139 {offsets = [0, 0], sizes = [8, 80], strides = [1, 1]} : vector<16x128xf32> to vector<8x80xf32>
    %c0_14 = arith.constant 0 : index
    %c0_15 = arith.constant 0 : index
    %141 = vector.load %arg8[%c0_14, %c0_15] : memref<72x256xf32, #tpu.memory_space<vmem>>, vector<8x80xf32>
    tpu.vector_store %arg8[%c0_14, %c0_15], %140 {strides = array<i32>} : memref<72x256xf32, #tpu.memory_space<vmem>>, vector<8x80xf32>,
    %142 = vector.extract_strided_slice %139 {offsets = [8, 0], sizes = [8, 80], strides = [1, 1]} : vector<16x128xf32> to vector<8x80xf32>
    %c0_16 = arith.constant 0 : index
    %c128 = arith.constant 128 : index
    %143 = vector.load %arg8[%c0_16, %c128] : memref<72x256xf32, #tpu.memory_space<vmem>>, vector<8x80xf32>
    tpu.vector_store %arg8[%c0_16, %c128], %142 {strides = array<i32>} : memref<72x256xf32, #tpu.memory_space<vmem>>, vector<8x80xf32>,
    %144 = vector.extract_strided_slice %139 {offsets = [0, 1], sizes = [8, 80], strides = [1, 1]} : vector<16x128xf32> to vector<8x80xf32>
    %c8 = arith.constant 8 : index
    %c0_17 = arith.constant 0 : index
    %145 = vector.load %arg8[%c8, %c0_17] : memref<72x256xf32, #tpu.memory_space<vmem>>, vector<8x80xf32>
    tpu.vector_store %arg8[%c8, %c0_17], %144 {strides = array<i32>} : memref<72x256xf32, #tpu.memory_space<vmem>>, vector<8x80xf32>,
    %146 = vector.extract_strided_slice %139 {offsets = [8, 1], sizes = [8, 80], strides = [1, 1]} : vector<16x128xf32> to vector<8x80xf32>
    %c8_18 = arith.constant 8 : index
    %c128_19 = arith.constant 128 : index
    %147 = vector.load %arg8[%c8_18, %c128_19] : memref<72x256xf32, #tpu.memory_space<vmem>>, vector<8x80xf32>
    tpu.vector_store %arg8[%c8_18, %c128_19], %146 {strides = array<i32>} : memref<72x256xf32, #tpu.memory_space<vmem>>, vector<8x80xf32>,
    %148 = vector.extract_strided_slice %139 {offsets = [0, 2], sizes = [8, 80], strides = [1, 1]} : vector<16x128xf32> to vector<8x80xf32>
    %c16 = arith.constant 16 : index
    %c0_20 = arith.constant 0 : index
    %149 = vector.load %arg8[%c16, %c0_20] : memref<72x256xf32, #tpu.memory_space<vmem>>, vector<8x80xf32>
    tpu.vector_store %arg8[%c16, %c0_20], %148 {strides = array<i32>} : memref<72x256xf32, #tpu.memory_space<vmem>>, vector<8x80xf32>,
    %150 = vector.extract_strided_slice %139 {offsets = [8, 2], sizes = [8, 80], strides = [1, 1]} : vector<16x128xf32> to vector<8x80xf32>
    %c16_21 = arith.constant 16 : index
    %c128_22 = arith.constant 128 : index
    %151 = vector.load %arg8[%c16_21, %c128_22] : memref<72x256xf32, #tpu.memory_space<vmem>>, vector<8x80xf32>
    tpu.vector_store %arg8[%c16_21, %c128_22], %150 {strides = array<i32>} : memref<72x256xf32, #tpu.memory_space<vmem>>, vector<8x80xf32>,
    %152 = vector.extract_strided_slice %139 {offsets = [0, 10], sizes = [8, 80], strides = [1, 1]} : vector<16x128xf32> to vector<8x80xf32>
    %c24 = arith.constant 24 : index
    %c0_23 = arith.constant 0 : index
    %153 = vector.load %arg8[%c24, %c0_23] : memref<72x256xf32, #tpu.memory_space<vmem>>, vector<8x80xf32>
    tpu.vector_store %arg8[%c24, %c0_23], %152 {strides = array<i32>} : memref<72x256xf32, #tpu.memory_space<vmem>>, vector<8x80xf32>,
    %154 = vector.extract_strided_slice %139 {offsets = [8, 10], sizes = [8, 80], strides = [1, 1]} : vector<16x128xf32> to vector<8x80xf32>
    %c24_24 = arith.constant 24 : index
    %c128_25 = arith.constant 128 : index
    %155 = vector.load %arg8[%c24_24, %c128_25] : memref<72x256xf32, #tpu.memory_space<vmem>>, vector<8x80xf32>
    tpu.vector_store %arg8[%c24_24, %c128_25], %154 {strides = array<i32>} : memref<72x256xf32, #tpu.memory_space<vmem>>, vector<8x80xf32>,
    %156 = vector.extract_strided_slice %139 {offsets = [0, 11], sizes = [8, 80], strides = [1, 1]} : vector<16x128xf32> to vector<8x80xf32>
    %c32 = arith.constant 32 : index
    %c0_26 = arith.constant 0 : index
    %157 = vector.load %arg8[%c32, %c0_26] : memref<72x256xf32, #tpu.memory_space<vmem>>, vector<8x80xf32>
    tpu.vector_store %arg8[%c32, %c0_26], %156 {strides = array<i32>} : memref<72x256xf32, #tpu.memory_space<vmem>>, vector<8x80xf32>,
    %158 = vector.extract_strided_slice %139 {offsets = [8, 11], sizes = [8, 80], strides = [1, 1]} : vector<16x128xf32> to vector<8x80xf32>
    %c32_27 = arith.constant 32 : index
    %c128_28 = arith.constant 128 : index
    %159 = vector.load %arg8[%c32_27, %c128_28] : memref<72x256xf32, #tpu.memory_space<vmem>>, vector<8x80xf32>
    tpu.vector_store %arg8[%c32_27, %c128_28], %158 {strides = array<i32>} : memref<72x256xf32, #tpu.memory_space<vmem>>, vector<8x80xf32>,
    %160 = vector.extract_strided_slice %139 {offsets = [0, 12], sizes = [8, 80], strides = [1, 1]} : vector<16x128xf32> to vector<8x80xf32>
    %c40 = arith.constant 40 : index
    %c0_29 = arith.constant 0 : index
    %161 = vector.load %arg8[%c40, %c0_29] : memref<72x256xf32, #tpu.memory_space<vmem>>, vector<8x80xf32>
    tpu.vector_store %arg8[%c40, %c0_29], %160 {strides = array<i32>} : memref<72x256xf32, #tpu.memory_space<vmem>>, vector<8x80xf32>,
    %162 = vector.extract_strided_slice %139 {offsets = [8, 12], sizes = [8, 80], strides = [1, 1]} : vector<16x128xf32> to vector<8x80xf32>
    %c40_30 = arith.constant 40 : index
    %c128_31 = arith.constant 128 : index
    %163 = vector.load %arg8[%c40_30, %c128_31] : memref<72x256xf32, #tpu.memory_space<vmem>>, vector<8x80xf32>
    tpu.vector_store %arg8[%c40_30, %c128_31], %162 {strides = array<i32>} : memref<72x256xf32, #tpu.memory_space<vmem>>, vector<8x80xf32>,
    %164 = vector.extract_strided_slice %139 {offsets = [0, 20], sizes = [8, 80], strides = [1, 1]} : vector<16x128xf32> to vector<8x80xf32>
    %c48 = arith.constant 48 : index
    %c0_32 = arith.constant 0 : index
    %165 = vector.load %arg8[%c48, %c0_32] : memref<72x256xf32, #tpu.memory_space<vmem>>, vector<8x80xf32>
    tpu.vector_store %arg8[%c48, %c0_32], %164 {strides = array<i32>} : memref<72x256xf32, #tpu.memory_space<vmem>>, vector<8x80xf32>,
    %166 = vector.extract_strided_slice %139 {offsets = [8, 20], sizes = [8, 80], strides = [1, 1]} : vector<16x128xf32> to vector<8x80xf32>
    %c48_33 = arith.constant 48 : index
    %c128_34 = arith.constant 128 : index
    %167 = vector.load %arg8[%c48_33, %c128_34] : memref<72x256xf32, #tpu.memory_space<vmem>>, vector<8x80xf32>
    tpu.vector_store %arg8[%c48_33, %c128_34], %166 {strides = array<i32>} : memref<72x256xf32, #tpu.memory_space<vmem>>, vector<8x80xf32>,
    %168 = vector.extract_strided_slice %139 {offsets = [0, 21], sizes = [8, 80], strides = [1, 1]} : vector<16x128xf32> to vector<8x80xf32>
    %c56 = arith.constant 56 : index
    %c0_35 = arith.constant 0 : index
    %169 = vector.load %arg8[%c56, %c0_35] : memref<72x256xf32, #tpu.memory_space<vmem>>, vector<8x80xf32>
    tpu.vector_store %arg8[%c56, %c0_35], %168 {strides = array<i32>} : memref<72x256xf32, #tpu.memory_space<vmem>>, vector<8x80xf32>,
    %170 = vector.extract_strided_slice %139 {offsets = [8, 21], sizes = [8, 80], strides = [1, 1]} : vector<16x128xf32> to vector<8x80xf32>
    %c56_36 = arith.constant 56 : index
    %c128_37 = arith.constant 128 : index
    %171 = vector.load %arg8[%c56_36, %c128_37] : memref<72x256xf32, #tpu.memory_space<vmem>>, vector<8x80xf32>
    tpu.vector_store %arg8[%c56_36, %c128_37], %170 {strides = array<i32>} : memref<72x256xf32, #tpu.memory_space<vmem>>, vector<8x80xf32>,
    %172 = vector.extract_strided_slice %139 {offsets = [0, 22], sizes = [8, 80], strides = [1, 1]} : vector<16x128xf32> to vector<8x80xf32>
    %c64 = arith.constant 64 : index
    %c0_38 = arith.constant 0 : index
    %173 = vector.load %arg8[%c64, %c0_38] : memref<72x256xf32, #tpu.memory_space<vmem>>, vector<8x80xf32>
    tpu.vector_store %arg8[%c64, %c0_38], %172 {strides = array<i32>} : memref<72x256xf32, #tpu.memory_space<vmem>>, vector<8x80xf32>,
    %174 = vector.extract_strided_slice %139 {offsets = [8, 22], sizes = [8, 80], strides = [1, 1]} : vector<16x128xf32> to vector<8x80xf32>
    %c64_39 = arith.constant 64 : index
    %c128_40 = arith.constant 128 : index
    %175 = vector.load %arg8[%c64_39, %c128_40] : memref<72x256xf32, #tpu.memory_space<vmem>>, vector<8x80xf32>
    tpu.vector_store %arg8[%c64_39, %c128_40], %174 {strides = array<i32>} : memref<72x256xf32, #tpu.memory_space<vmem>>, vector<8x80xf32>,
    %c0_41 = arith.constant 0 : index
    %c0_42 = arith.constant 0 : index
    %176 = vector.load %arg3[%c0_41, %c0_42] : memref<16x72xf32, #tpu.memory_space<vmem>>, vector<16x72xf32>
    %c0_43 = arith.constant 0 : index
    %c0_44 = arith.constant 0 : index
    %177 = vector.load %arg8[%c0_43, %c0_44] : memref<72x256xf32, #tpu.memory_space<vmem>>, vector<72x256xf32>
    %cst_45 = arith.constant dense<0.000000e+00> : vector<16x256xf32>
    %178 = tpu.matmul %176, %177, %cst_45 {dimension_numbers = #tpu.dot_dimension_numbers<[1], [0], [0], [1], [0, 0, 1, 1], [], []>} : vector<16x72xf32>, vector<72x256xf32>, vector<16x256xf32> -> vector<16x256xf32>
    %c0_46 = arith.constant 0 : index
    %c0_47 = arith.constant 0 : index
    %179 = vector.load %arg4[%c0_46, %c0_47] : memref<16x1xf32, #tpu.memory_space<vmem>>, vector<16x1xf32>
    %180 = vector.broadcast %179 : vector<16x1xf32> to vector<16x256xf32>
    %181 = arith.addf %178, %180 : vector<16x256xf32>
    %cst_48 = arith.constant 0.000000e+00 : f32
    %182 = vector.broadcast %cst_48 : f32 to vector<16x256xf32>
    %183 = arith.maximumf %181, %182 : vector<16x256xf32>
    %184 = vector.extract_strided_slice %183 {offsets = [0, 0], sizes = [16, 67], strides = [1, 1]} : vector<16x256xf32> to vector<16x67xf32>
    %185 = vector.extract_strided_slice %183 {offsets = [0, 1], sizes = [16, 67], strides = [1, 1]} : vector<16x256xf32> to vector<16x67xf32>
    %186 = arith.maximumf %184, %185 : vector<16x67xf32>
    %187 = vector.extract_strided_slice %183 {offsets = [0, 10], sizes = [16, 67], strides = [1, 1]} : vector<16x256xf32> to vector<16x67xf32>
    %188 = vector.extract_strided_slice %183 {offsets = [0, 11], sizes = [16, 67], strides = [1, 1]} : vector<16x256xf32> to vector<16x67xf32>
    %189 = arith.maximumf %187, %188 : vector<16x67xf32>
    %190 = arith.maximumf %186, %189 : vector<16x67xf32>
    %191 = vector.extract_strided_slice %183 {offsets = [0, 128], sizes = [16, 67], strides = [1, 1]} : vector<16x256xf32> to vector<16x67xf32>
    %192 = vector.extract_strided_slice %183 {offsets = [0, 129], sizes = [16, 67], strides = [1, 1]} : vector<16x256xf32> to vector<16x67xf32>
    %193 = arith.maximumf %191, %192 : vector<16x67xf32>
    %194 = vector.extract_strided_slice %183 {offsets = [0, 138], sizes = [16, 67], strides = [1, 1]} : vector<16x256xf32> to vector<16x67xf32>
    %195 = vector.extract_strided_slice %183 {offsets = [0, 139], sizes = [16, 67], strides = [1, 1]} : vector<16x256xf32> to vector<16x67xf32>
    %196 = arith.maximumf %194, %195 : vector<16x67xf32>
    %197 = arith.maximumf %193, %196 : vector<16x67xf32>
    %198 = tpu.concatenate %190, %197 in 0 : vector<16x67xf32>, vector<16x67xf32> -> vector<32x67xf32>
    %c0_49 = arith.constant 0 : index
    %c0_50 = arith.constant 0 : index
    %199 = vector.load %arg6[%c0_49, %c0_50] : memref<67x16xf32, #tpu.memory_space<vmem>>, vector<67x16xf32>
    %cst_51 = arith.constant dense<0.000000e+00> : vector<32x16xf32>
    %200 = tpu.matmul %198, %199, %cst_51 {dimension_numbers = #tpu.dot_dimension_numbers<[1], [0], [0], [1], [0, 0, 1, 1], [], []>} : vector<32x67xf32>, vector<67x16xf32>, vector<32x16xf32> -> vector<32x16xf32>
    %201 = vector.extract_strided_slice %200 {offsets = [0, 0], sizes = [16, 16], strides = [1, 1]} : vector<32x16xf32> to vector<16x16xf32>
    %202 = vector.extract_strided_slice %200 {offsets = [16, 0], sizes = [16, 16], strides = [1, 1]} : vector<32x16xf32> to vector<16x16xf32>
    %203 = arith.subf %201, %202 : vector<16x16xf32>
    %c0_52 = arith.constant 0 : index
    %c0_53 = arith.constant 0 : index
    %204 = vector.load %arg7[%c0_52, %c0_53] : memref<16x16xf32, #tpu.memory_space<vmem>>, vector<16x16xf32>
    tpu.vector_store %arg7[%c0_52, %c0_53], %203 {strides = array<i32>} : memref<16x16xf32, #tpu.memory_space<vmem>>, vector<16x16xf32>,
    return
  }
}

</mosaic_0001>

<bundles_post_ra>
// kernel: snn_forward.1
= control target key start
LH: loop header
LB: loop body
LE: loop exit
PB: predicated region body
PF: predicated region fallthrough
CT: control target
= control target key end

     0   :  { %12 = vsyncpa [#allocation4], 0  ;;  %s1365_s24 = smov [#allocation3]   ;;  %s1950_s0 = inlined_call_operand.vmem [shape: f32[2,342], index: 0, kind: input, shape index: {}]   ;;  %s1951_s1 = inlined_call_operand.hbm [shape: f32[8,9], index: 1, kind: input, shape index: {}]   ;;  %s1952_s2 = inlined_call_operand.vmem [shape: f32[8,1], index: 2, kind: input, shape index: {}]   ;;  %s1953_s3 = inlined_call_operand.vmem [shape: f32[16,72], index: 3, kind: input, shape index: {}]   ;;  %s1954_s4 = inlined_call_operand.vmem [shape: f32[16,1], index: 4, kind: input, shape index: {}]   ;;  %s1955_s5 = inlined_call_operand.vmem [shape: f32[267,128], index: 5, kind: input, shape index: {}]   ;;  %s1956_s6 = inlined_call_operand.vmem [shape: f32[67,16], index: 6, kind: input, shape index: {}]   ;;  %s1957_s7 = inlined_call_operand.vmem [shape: f32[16,16], index: 7, kind: output, shape index: {}]  }
   0x1   :  { %s21_s25 = sshll.u32 %s1365_s24, 4  ;;  %s1341_s28 = scalar_lea.hbm %s1951_s1, 128  ;;  %s22_s25 = int_to_ptr.vmem [resolvable:$true] %s21_s25 }
   0x2   :  { %p1342_p0 = scmp.ne.s32.totalorder %s1951_s1, %s1341_s28  ;;  %p1345_p1 = scmp.lt.u32.totalorder %s1341_s28, %s1951_s1 }
   0x4   :  { %p1347_p2 = pnand %p1345_p1, %p1342_p0 }
   0x6   :  { %1350 = shalt.err (!%p1347_p2)
}
   0x7   :  { %s1351_s10 = scalar_lea.vmem %s22_s25, 128  ;;  %p1356_p4 = scmp.lt.s32.totalorder %s22_s25, %s22_s25 }
   0x8   :  { %p1352_p3 = scmp.ne.s32.totalorder %s22_s25, %s1351_s10  ;;  %p1357_p5 = scmp.lt.s32.totalorder %s1351_s10, %s1351_s10 }
   0xa   :  { %p1358_p6 = por %p1357_p5, %p1356_p4 }
   0xc   :  { %p1359_p7 = pnand %p1358_p6, %p1352_p3 }
   0xe   :  { %1362 = shalt.err (!%p1359_p7)
}
   0xf   :  { %24 = dma.hbm_to_vmem [thread:$0]  %s1951_s1, 128, %s22_s25, [#allocation4]  }
  0x10   :  { %1363 = dma.done.wait [#allocation4], 128  }
  0x11   :  { %1364 = vsyncadd [#allocation4], 4294967168  ;;  %v1366_v0 = vmov 1   ;;  %v1367_v1 = vmov 3   ;;  %v57_v2 = vld [vmem:[#allocation3] sm:$0xff]  ;;  %v1368_v3 = vmov 2   ;;  %v65_v11 = vlaneseq }
  0x12   :  { %1311 = vset.pattern.permute.xlu0 %v1366_v0  ;;  %1313 = vset.pattern.permute.xlu1 %v1367_v1  ;;  %v1369_v4 = vmov 4   ;;  %v1370_v5 = vmov 5   ;;  %v1371_v6 = vmov 6   ;;  %v1372_v7 = vmov 7   ;;  %v58_v9 = vld [vmem:[%s1952_s2] sm:$0xff]  ;;  %s1375_s2 = smov 127  }
  0x13   :  { %132 = vperm.xlu0 %1311, %v57_v2   ;;  %222 = vperm.xlu1 %1313, %v57_v2   ;;  %v1373_v8 = vmov 0   ;;  %v1374_v10 = vmov 8   ;;  %v66_v12 = vshrl.u32 %v65_v11, 7  ;;  %v56_v15 = vld [vmem:[%s1950_s0] sm:$0x3f]  ;;  %s1376_s0 = smov 126  }
  0x14   :  { %s1377_s16 = smov 110   ;;  %s1378_s17 = smov 109   ;;  %vm147_vm0 = vcmask 1039360   ;;  %vm192_vm1 = vcmask 1031168   ;;  %vm237_vm2 = vcmask 900096   ;;  %vm282_vm3 = vcmask 891904  }
  0x15   :  { %v67_v13 = vsub.s32 0, %v66_v12  ;;  %v71_v14 = vsub.s32 2, %v66_v12  ;;  %v75_v18 = vsub.s32 4, %v66_v12  ;;  %v104_v22 = vsub.s32 3, %v66_v12  ;;  %s1379_s18 = smov 108   ;;  %s1380_s19 = smov 92  }
  0x16   :  { %v100_v28 = vsub.s32 1, %v66_v12  ;;  %v108_v31 = vsub.s32 5, %v66_v12  ;;  %s1381_s20 = smov 91   ;;  %s1382_s21 = smov 90   ;;  %vm327_vm4 = vcmask 883712   ;;  %vm372_vm5 = vcmask 752640  }
  0x17   :  { %1312 = vset.pattern.permute.xlu0 %v1368_v3  ;;  %1314 = vset.pattern.permute.xlu1 %v1369_v4  ;;  %v72_v16 = vrot.slane %v56_v15, %v71_v14  ;;  %v68_v17 = vrot.slane %v56_v15, %v67_v13  ;;  %v76_v21 = vrot.slane %v56_v15, %v75_v18  ;;  %vm417_vm6 = vcmask 744448   ;;  %s1387_s24 = smov 107   ;;  %s1388_s25 = smov 117  }
  0x18   :  { %177 = vperm.xlu0 %1312, %v57_v2   ;;  %267 = vperm.xlu1 %1314, %v57_v2   ;;  %v105_v27 = vrot.slane %v56_v15, %v104_v22  ;;  %v109_v36 = vrot.slane %v56_v15, %v108_v31  ;;  %v101_v37 = vrot.slane %v56_v15, %v100_v28  ;;  %vm462_vm7 = vcmask 736256   ;;  %s1389_s26 = smov 106  }
  0x19   :  { %v1448_v19 = vrot.slane %v72_v16, %v67_v13  ;;  %v1450_v20 = vrot.slane %v68_v17, %v67_v13  ;;  %v1454_v26 = vrot.slane %v76_v21, %v67_v13  ;;  %vm617_vm8 = vcmask 1042432  }
  0x1a   :  { %v1460_v33 = vrot.slane %v105_v27, %v100_v28  ;;  %v1472_v42 = vrot.slane %v109_v36, %v100_v28  ;;  %v1474_v43 = vrot.slane %v101_v37, %v100_v28  ;;  %vm1383_vm9 = vmmov 1  }
  0x1b   :  { %vm1826_vm10 = vmpackc.low %vm617_vm8, %vm1383_vm9  ;;  %vm610_vm11 = vcmask 89088   ;;  %vm771_vm12 = vcmask 654336   ;;  %vm872_vm13 = vcmask 588800   ;;  %vm1009_vm14 = vcmask 547840  }
  0x1c   :  { %1315 = vset.pattern.permute.xlu1 %v1370_v5  ;;  %1316 = vset.pattern.permute.xlu0 %v1371_v6  ;;  %vm1112_vm15 = vcmask 130048  }
  0x1d   :  { %312 = vperm.xlu1 %1315, %v57_v2   ;;  %357 = vperm.xlu0 %1316, %v57_v2  }
  0x21   :  { %1317 = vset.pattern.permute.xlu1 %v1372_v7  ;;  %1319 = vset.pattern.permute.xlu0 %v1373_v8 }
  0x22   :  { %402 = vperm.xlu1 %1317, %v57_v2   ;;  %61 = vperm.xlu0 %1319, %v57_v2  }
  0x26   :  { %1318 = vset.pattern.permute.xlu1 %v1374_v10  ;;  %493 = vperm.xlu0 %1319, %v58_v9  }
  0x27   :  { %447 = vperm.xlu1 %1318, %v57_v2  }
  0x2b   :  { %1340 = vset.pattern.permute.xlu1 %v1373_v8 }
  0x92   :  { %v133_v23 = vpop.permute.xlu0 %132  ;;  %v223_v35 = vpop.permute.xlu1 %222 }
  0x93   :  { %v136_v24 = vmul.f32 %v133_v23, %v1448_v19  ;;  %v135_v25 = vmul.f32 %v133_v23, %v1450_v20  ;;  %v137_v30 = vmul.f32 %v133_v23, %v1454_v26  ;;  %v157_v38 = vmul.f32 %v133_v23, %v1460_v33 }
  0x94   :  { %v226_v39 = vmul.f32 %v223_v35, %v1448_v19  ;;  %v158_v45 = vmul.f32 %v133_v23, %v1472_v42  ;;  %v156_v46 = vmul.f32 %v133_v23, %v1474_v43  ;;  %v227_v53 = vmul.f32 %v223_v35, %v1454_v26 }
  0x95   :  { %143 = vrot.lane.b32.xlu1 %v136_v24, %s1375_s2  ;;  %141 = vrot.lane.b32.xlu0 %v135_v25, %s1375_s2  ;;  %v225_v57 = vmul.f32 %v223_v35, %v1450_v20  ;;  %v247_v62 = vmul.f32 %v223_v35, %v1460_v33  ;;  %v248_v1 = vmul.f32 %v223_v35, %v1472_v42 }
  0x96   :  { %v246_v2 = vmul.f32 %v223_v35, %v1474_v43 }
  0x97   :  { %v178_v29 = vpop.permute.xlu0 %177  ;;  %v268_v54 = vpop.permute.xlu1 %267 }
  0x98   :  { %v182_v32 = vmul.f32 %v178_v29, %v1454_v26  ;;  %v181_v34 = vmul.f32 %v178_v29, %v1448_v19  ;;  %v180_v41 = vmul.f32 %v178_v29, %v1450_v20  ;;  %v202_v55 = vmul.f32 %v178_v29, %v1460_v33 }
  0x99   :  { %145 = vrot.lane.b32.xlu1 %v137_v30, %s1375_s2  ;;  %v271_v56 = vmul.f32 %v268_v54, %v1448_v19  ;;  %v203_v58 = vmul.f32 %v178_v29, %v1472_v42  ;;  %v201_v59 = vmul.f32 %v178_v29, %v1474_v43  ;;  %v272_v60 = vmul.f32 %v268_v54, %v1454_v26 }
  0x9a   :  { %190 = vrot.lane.b32.xlu0 %v182_v32, %s1376_s0  ;;  %v270_v0 = vmul.f32 %v268_v54, %v1450_v20  ;;  %v292_v4 = vmul.f32 %v268_v54, %v1460_v33  ;;  %v293_v8 = vmul.f32 %v268_v54, %v1472_v42  ;;  %v291_v13 = vmul.f32 %v268_v54, %v1474_v43 }
  0x9c   :  { %v1469_v40 = vpop.permute.xlu0 %357  ;;  %v313_v61 = vpop.permute.xlu1 %312 }
  0x9d   :  { %188 = vrot.lane.b32.xlu1 %v181_v34, %s1376_s0  ;;  %v316_v63 = vmul.f32 %v313_v61, %v1448_v19  ;;  %v317_v3 = vmul.f32 %v313_v61, %v1454_v26  ;;  %v361_v5 = vmul.f32 %v1469_v40, %v1448_v19  ;;  %v315_v6 = vmul.f32 %v313_v61, %v1450_v20 }
  0x9e   :  { %164 = vrot.lane.b32.xlu0 %v157_v38, %s1375_s2  ;;  %v360_v7 = vmul.f32 %v1469_v40, %v1450_v20  ;;  %v362_v9 = vmul.f32 %v1469_v40, %v1454_v26  ;;  %v338_v11 = vmul.f32 %v313_v61, %v1472_v42  ;;  %v337_v15 = vmul.f32 %v313_v61, %v1460_v33 }
  0x9f   :  { %v383_v18 = vmul.f32 %v1469_v40, %v1472_v42  ;;  %v336_v22 = vmul.f32 %v313_v61, %v1474_v43  ;;  %v382_v24 = vmul.f32 %v1469_v40, %v1460_v33 }
  0xa1   :  { %186 = vrot.lane.b32.xlu1 %v180_v41, %s1376_s0  ;;  %v62_v44 = vpop.permute.xlu0 %61  ;;  %v403_v10 = vpop.permute.xlu1 %402 }
  0xa2   :  { %233 = vrot.lane.b32.xlu0 %v226_v39, %s1377_s16  ;;  %v1481_v47 = vmul.f32 %v1450_v20, %v62_v44  ;;  %v1484_v48 = vmul.f32 %v1454_v26, %v62_v44  ;;  %v1487_v49 = vmul.f32 %v1448_v19, %v62_v44  ;;  %v1490_v50 = vmul.f32 %v1460_v33, %v62_v44 }
  0xa3   :  { %v1493_v51 = vmul.f32 %v1472_v42, %v62_v44  ;;  %v1496_v52 = vmul.f32 %v1474_v43, %v62_v44  ;;  %v407_v12 = vmul.f32 %v403_v10, %v1454_v26  ;;  %v405_v14 = vmul.f32 %v403_v10, %v1450_v20 }
  0xa4   :  { %v406_v16 = vmul.f32 %v403_v10, %v1448_v19  ;;  %v428_v27 = vmul.f32 %v403_v10, %v1472_v42 }
  0xa5   :  { %166 = vrot.lane.b32.xlu1 %v158_v45, %s1375_s2  ;;  %v1576_v31 = vpop.permute.xlu0 %493 }
  0xa6   :  { %162 = vrot.lane.b32.xlu0 %v156_v46, %s1375_s2  ;;  %v448_v17 = vpop.permute.xlu1 %447 }
  0xa7   :  { %v452_v21 = vmul.f32 %v448_v17, %v1454_v26  ;;  %v450_v23 = vmul.f32 %v448_v17, %v1450_v20  ;;  %v451_v25 = vmul.f32 %v448_v17, %v1448_v19  ;;  %v381_v26 = vmul.f32 %v1469_v40, %v1474_v43 }
  0xa8   :  { %v472_v28 = vmul.f32 %v448_v17, %v1460_v33  ;;  %v427_v20 = vmul.f32 %v403_v10, %v1460_v33  ;;  %v471_v29 = vmul.f32 %v448_v17, %v1474_v43  ;;  %v426_v19 = vmul.f32 %v403_v10, %v1474_v43 }
  0xa9   :  { %235 = vrot.lane.b32.xlu1 %v227_v53, %s1377_s16  ;;  %v473_v30 = vmul.f32 %v448_v17, %v1472_v42 }
  0xaa   :  { %209 = vrot.lane.b32.xlu0 %v202_v55, %s1376_s0 }
  0xad   :  { %231 = vrot.lane.b32.xlu1 %v225_v57, %s1377_s16 }
  0xae   :  { %278 = vrot.lane.b32.xlu0 %v271_v56, %s1378_s17 }
  0xb1   :  { %211 = vrot.lane.b32.xlu1 %v203_v58, %s1376_s0 }
  0xb2   :  { %207 = vrot.lane.b32.xlu0 %v201_v59, %s1376_s0 }
  0xb5   :  { %280 = vrot.lane.b32.xlu1 %v272_v60, %s1378_s17 }
  0xb6   :  { %254 = vrot.lane.b32.xlu0 %v247_v62, %s1377_s16 }
  0xb9   :  { %276 = vrot.lane.b32.xlu1 %v270_v0, %s1378_s17 }
  0xba   :  { %323 = vrot.lane.b32.xlu0 %v316_v63, %s1379_s18 }
  0xbd   :  { %256 = vrot.lane.b32.xlu1 %v248_v1, %s1377_s16 }
  0xbe   :  { %252 = vrot.lane.b32.xlu0 %v246_v2, %s1377_s16 }
  0xc1   :  { %325 = vrot.lane.b32.xlu1 %v317_v3, %s1379_s18 }
  0xc2   :  { %299 = vrot.lane.b32.xlu0 %v292_v4, %s1378_s17 }
  0xc5   :  { %321 = vrot.lane.b32.xlu1 %v315_v6, %s1379_s18 }
  0xc6   :  { %368 = vrot.lane.b32.xlu0 %v361_v5, %s1380_s19 }
  0xc9   :  { %301 = vrot.lane.b32.xlu1 %v293_v8, %s1378_s17 }
  0xca   :  { %366 = vrot.lane.b32.xlu0 %v360_v7, %s1380_s19 }
  0xcd   :  { %370 = vrot.lane.b32.xlu1 %v362_v9, %s1380_s19 }
  0xce   :  { %346 = vrot.lane.b32.xlu0 %v338_v11, %s1379_s18 }
  0xd1   :  { %297 = vrot.lane.b32.xlu1 %v291_v13, %s1378_s17 }
  0xd2   :  { %415 = vrot.lane.b32.xlu0 %v407_v12, %s1381_s20 }
  0xd5   :  { %344 = vrot.lane.b32.xlu1 %v337_v15, %s1379_s18 }
  0xd6   :  { %411 = vrot.lane.b32.xlu0 %v405_v14, %s1381_s20 }
  0xd9   :  { %413 = vrot.lane.b32.xlu1 %v406_v16, %s1381_s20 }
  0xda   :  { %391 = vrot.lane.b32.xlu0 %v383_v18, %s1380_s19 }
  0xdd   :  { %342 = vrot.lane.b32.xlu1 %v336_v22, %s1379_s18 }
  0xde   :  { %460 = vrot.lane.b32.xlu0 %v452_v21, %s1382_s21 }
  0xe1   :  { %389 = vrot.lane.b32.xlu1 %v382_v24, %s1380_s19 }
  0xe2   :  { %456 = vrot.lane.b32.xlu0 %v450_v23, %s1382_s21 }
  0xe5   :  { %458 = vrot.lane.b32.xlu1 %v451_v25, %s1382_s21 }
  0xe6   :  { %436 = vrot.lane.b32.xlu0 %v428_v27, %s1381_s20 }
  0xe9   :  { %387 = vrot.lane.b32.xlu1 %v381_v26, %s1380_s19 }
  0xea   :  { %479 = vrot.lane.b32.xlu0 %v472_v28, %s1382_s21 }
  0xed   :  { %434 = vrot.lane.b32.xlu1 %v427_v20, %s1381_s20 }
  0xee   :  { %477 = vrot.lane.b32.xlu0 %v471_v29, %s1382_s21 }
  0xf1   :  { %432 = vrot.lane.b32.xlu1 %v426_v19, %s1381_s20 }
  0xf5   :  { %481 = vrot.lane.b32.xlu1 %v473_v30, %s1382_s21 }
 0x107   :  { %v144_v32 = vpop.permute.xlu1 %143  ;;  %v142_v34 = vpop.permute.xlu0 %141 }
 0x108   :  { %v148_v35 = vsel %vm147_vm0, %v142_v34, %v144_v32 }
 0x109   :  { %v153_v33 = vadd.f32 %v148_v35, %v1481_v47 }
 0x10b   :  { %v146_v36 = vpop.permute.xlu1 %145 }
 0x10c   :  { %v149_v37 = vsel %vm147_vm0, %v144_v32, %v146_v36  ;;  %v191_v38 = vpop.permute.xlu0 %190  ;;  %v155_v8 = vadd.f32 %v146_v36, %v1484_v48 }
 0x10d   :  { %v154_v39 = vadd.f32 %v149_v37, %v1487_v49 }
 0x10e   :  { %v200_v11 = vadd.f32 %v191_v38, %v155_v8 }
 0x10f   :  { %v189_v40 = vpop.permute.xlu1 %188 }
 0x110   :  { %v165_v41 = vpop.permute.xlu0 %164  ;;  %v194_v16 = vsel %vm192_vm1, %v189_v40, %v191_v38 }
 0x111   :  { %v199_v24 = vadd.f32 %v194_v16, %v154_v39 }
 0x113   :  { %v187_v43 = vpop.permute.xlu1 %186 }
 0x114   :  { %v234_v42 = vpop.permute.xlu0 %233  ;;  %v193_v17 = vsel %vm192_vm1, %v187_v43, %v189_v40 }
 0x115   :  { %v198_v25 = vadd.f32 %v193_v17, %v153_v33 }
 0x117   :  { %v167_v44 = vpop.permute.xlu1 %166 }
 0x118   :  { %v169_v45 = vsel %vm147_vm0, %v165_v41, %v167_v44  ;;  %v1584_v46 = vadd.f32 %v167_v44, %v1493_v51  ;;  %v163_v53 = vpop.permute.xlu0 %162 }
 0x119   :  { %v1587_v54 = vadd.f32 %v169_v45, %v1490_v50  ;;  %v168_v47 = vsel %vm147_vm0, %v163_v53, %v165_v41 }
 0x11a   :  { %v1591_v55 = vadd.f32 %v168_v47, %v1496_v52 }
 0x11b   :  { %v236_v49 = vpop.permute.xlu1 %235 }
 0x11c   :  { %v1593_v56 = vpop.permute.xlu0 %209  ;;  %v245_v12 = vadd.f32 %v236_v49, %v200_v11  ;;  %v239_v48 = vsel %vm237_vm2, %v234_v42, %v236_v49 }
 0x11d   :  { %v244_v20 = vadd.f32 %v239_v48, %v199_v24 }
 0x11f   :  { %v232_v57 = vpop.permute.xlu1 %231 }
 0x120   :  { %v279_v58 = vpop.permute.xlu0 %278  ;;  %v238_v22 = vsel %vm237_vm2, %v232_v57, %v234_v42 }
 0x121   :  { %v243_v29 = vadd.f32 %v238_v22, %v198_v25 }
 0x123   :  { %v1595_v59 = vpop.permute.xlu1 %211 }
 0x124   :  { %v1597_v60 = vpop.permute.xlu0 %207  ;;  %v214_v8 = vsel %vm192_vm1, %v1593_v56, %v1595_v59 }
 0x127   :  { %v281_v51 = vpop.permute.xlu1 %280 }
 0x128   :  { %v1599_v61 = vpop.permute.xlu0 %254  ;;  %v290_v15 = vadd.f32 %v281_v51, %v245_v12  ;;  %v284_v26 = vsel %vm282_vm3, %v279_v58, %v281_v51 }
 0x129   :  { %v289_v36 = vadd.f32 %v284_v26, %v244_v20 }
 0x12b   :  { %v277_v62 = vpop.permute.xlu1 %276 }
 0x12c   :  { %v324_v50 = vpop.permute.xlu0 %323  ;;  %v283_v28 = vsel %vm282_vm3, %v277_v62, %v279_v58 }
 0x12d   :  { %v288_v37 = vadd.f32 %v283_v28, %v243_v29 }
 0x12f   :  { %v1601_v63 = vpop.permute.xlu1 %256 }
 0x130   :  { %v1603_v0 = vpop.permute.xlu0 %252 }
 0x133   :  { %v326_v52 = vpop.permute.xlu1 %325 }
 0x134   :  { %v1605_v1 = vpop.permute.xlu0 %299  ;;  %v335_v18 = vadd.f32 %v326_v52, %v290_v15  ;;  %v329_v32 = vsel %vm327_vm4, %v324_v50, %v326_v52  ;;  %v220_v15 = vadd.f32 %v1595_v59, %v1584_v46 }
 0x135   :  { %v334_v40 = vadd.f32 %v329_v32, %v289_v36 }
 0x136   :  { %v265_v48 = vadd.f32 %v1601_v63, %v220_v15 }
 0x137   :  { %v322_v2 = vpop.permute.xlu1 %321 }
 0x138   :  { %v369_v3 = vpop.permute.xlu0 %368  ;;  %v328_v34 = vsel %vm327_vm4, %v322_v2, %v324_v50  ;;  %v213_v50 = vsel %vm192_vm1, %v1597_v60, %v1593_v56  ;;  %v259_v56 = vsel %vm237_vm2, %v1599_v61, %v1601_v63 }
 0x139   :  { %v333_v41 = vadd.f32 %v328_v34, %v288_v37  ;;  %v218_v11 = vadd.f32 %v213_v50, %v1591_v55  ;;  %v219_v55 = vadd.f32 %v214_v8, %v1587_v54  ;;  %v596_v8 = vld [vmem:[%s1955_s5 + $0xa0] sm:$0xff] }
 0x13b   :  { %v1607_v4 = vpop.permute.xlu1 %301 }
 0x13c   :  { %v367_v5 = vpop.permute.xlu0 %366  ;;  %v304_v46 = vsel %vm282_vm3, %v1605_v1, %v1607_v4  ;;  %v310_v24 = vadd.f32 %v1607_v4, %v265_v48 }
 0x13d   :  { %v373_v38 = vsel %vm372_vm5, %v367_v5, %v369_v3 }
 0x13e   :  { %v378_v47 = vadd.f32 %v373_v38, %v333_v41 }
 0x13f   :  { %v371_v6 = vpop.permute.xlu1 %370 }
 0x140   :  { %v1609_v7 = vpop.permute.xlu0 %346  ;;  %v380_v27 = vadd.f32 %v371_v6, %v335_v18  ;;  %v374_v39 = vsel %vm372_vm5, %v369_v3, %v371_v6 }
 0x141   :  { %v379_v49 = vadd.f32 %v374_v39, %v334_v40  ;;  %v355_v26 = vadd.f32 %v1609_v7, %v310_v24  ;;  %v585_v24 = vld [vmem:[%s1955_s5 + $0x48] sm:$0xff] }
 0x143   :  { %v1612_v9 = vpop.permute.xlu1 %297 }
 0x144   :  { %v416_v10 = vpop.permute.xlu0 %415 }
 0x145   :  { %v425_v19 = vadd.f32 %v416_v10, %v380_v27 }
 0x147   :  { %v1614_v13 = vpop.permute.xlu1 %344 }
 0x148   :  { %v412_v14 = vpop.permute.xlu0 %411  ;;  %v349_v63 = vsel %vm327_vm4, %v1614_v13, %v1609_v7 }
 0x14b   :  { %v414_v21 = vpop.permute.xlu1 %413 }
 0x14c   :  { %v1620_v23 = vpop.permute.xlu0 %391  ;;  %v418_v44 = vsel %vm417_vm6, %v412_v14, %v414_v21  ;;  %v419_v45 = vsel %vm417_vm6, %v414_v21, %v416_v10  ;;  %v258_v10 = vsel %vm237_vm2, %v1603_v0, %v1599_v61  ;;  %v303_v0 = vsel %vm282_vm3, %v1612_v9, %v1605_v1 }
 0x14d   :  { %v423_v58 = vadd.f32 %v418_v44, %v378_v47  ;;  %v424_v51 = vadd.f32 %v419_v45, %v379_v49  ;;  %v263_v16 = vadd.f32 %v258_v10, %v218_v11  ;;  %v264_v61 = vadd.f32 %v259_v56, %v219_v55  ;;  %v592_v45 = vld [vmem:[%s1955_s5 + $0x80] sm:$0xff]  ;;  %v597_v10 = vld [vmem:[%s1955_s5 + $0xa8] sm:$0xff] }
 0x14e   :  { %v400_v4 = vadd.f32 %v1620_v23, %v355_v26  ;;  %v576_v47 = vld [vmem:[%s1955_s5] sm:$0xff]  ;;  %v1224_v15 = vpack.c.bf16 %v597_v10, %v596_v8 }
 0x14f   :  { %v343_v30 = vpop.permute.xlu1 %342  ;;  %v308_v22 = vadd.f32 %v303_v0, %v263_v16  ;;  %v309_v1 = vadd.f32 %v304_v46, %v264_v61  ;;  %v580_v56 = vld [vmem:[%s1955_s5 + $0x20] sm:$0xff]  ;;  %v581_v0 = vld [vmem:[%s1955_s5 + $0x28] sm:$0xff]  ;;  %v598_v16 = vld [vmem:[%s1955_s5 + $0xb0] sm:$0xff] }
 0x150   :  { %v461_v35 = vpop.permute.xlu0 %460  ;;  %v348_v59 = vsel %vm327_vm4, %v343_v30, %v1614_v13  ;;  %v1226_v55 = vpack.c.bf16 %v581_v0, %v580_v56  ;;  %v582_v46 = vld [vmem:[%s1955_s5 + $0x30] sm:$0xff]  ;;  %v600_v61 = vld [vmem:[%s1955_s5 + $0xc0] sm:$0xff] }
 0x151   :  { %v470_v33 = vadd.f32 %v461_v35, %v425_v19  ;;  %v353_v27 = vadd.f32 %v348_v59, %v308_v22  ;;  %v354_v20 = vadd.f32 %v349_v63, %v309_v1  ;;  %v583_v59 = vld [vmem:[%s1955_s5 + $0x38] sm:$0xff] }
 0x152   :  { %v1230_v22 = vpack.c.bf16 %v583_v59, %v582_v46  ;;  %v603_v1 = vld [vmem:[%s1955_s5 + $0xd8] sm:$0xff] }
 0x153   :  { %v1629_v43 = vadd.f32 %v1576_v31, %v470_v33  ;;  %v390_v42 = vpop.permute.xlu1 %389 }
 0x154   :  { %v457_v53 = vpop.permute.xlu0 %456  ;;  %v394_v28 = vsel %vm372_vm5, %v390_v42, %v1620_v23 }
 0x155   :  { %v501_v57 = vmax.f32 %v1629_v43, 0.0  ;;  %v399_v34 = vadd.f32 %v394_v28, %v354_v20  ;;  %v586_v28 = vld [vmem:[%s1955_s5 + $0x50] sm:$0xff]  ;;  %v587_v20 = vld [vmem:[%s1955_s5 + $0x58] sm:$0xff] }
 0x156   :  { %v590_v43 = vld [vmem:[%s1955_s5 + $0x70] sm:$0xff] }
 0x157   :  { %v459_v62 = vpop.permute.xlu1 %458  ;;  %515 = vrot.lane.b32.xlu0 %v501_v57, %s1375_s2 }
 0x158   :  { %v463_v52 = vsel %vm462_vm7, %v457_v53, %v459_v62  ;;  %v464_v2 = vsel %vm462_vm7, %v459_v62, %v461_v35  ;;  %v437_v3 = vpop.permute.xlu0 %436  ;;  %v593_v53 = vld [vmem:[%s1955_s5 + $0x88] sm:$0xff]  ;;  %v595_v62 = vld [vmem:[%s1955_s5 + $0x98] sm:$0xff] }
 0x159   :  { %v468_v5 = vadd.f32 %v463_v52, %v423_v58  ;;  %v469_v6 = vadd.f32 %v464_v2, %v424_v51  ;;  %v445_v36 = vadd.f32 %v437_v3, %v400_v4  ;;  %v1216_v58 = vpack.c.bf16 %v593_v53, %v592_v45  ;;  %v594_v51 = vld [vmem:[%s1955_s5 + $0x90] sm:$0xff] }
 0x15b   :  { %v1650_v12 = vadd.f32 %v1576_v31, %v468_v5  ;;  %v1653_v60 = vadd.f32 %v1576_v31, %v469_v6  ;;  %v388_v14 = vpop.permute.xlu1 %387  ;;  %v578_v5 = vld [vmem:[%s1955_s5 + $0x10] sm:$0xff]  ;;  %v579_v6 = vld [vmem:[%s1955_s5 + $0x18] sm:$0xff]  ;;  %1217 = vmatprep.subr.bf16.mxu0 %v1216_v58 }
 0x15c   :  { %v480_v21 = vpop.permute.xlu0 %479  ;;  %v393_v25 = vsel %vm372_vm5, %v388_v14, %v390_v42  ;;  %v1222_v14 = vpack.c.bf16 %v579_v6, %v578_v5 }
 0x15d   :  { %v499_v17 = vmax.f32 %v1650_v12, 0.0  ;;  %v500_v18 = vmax.f32 %v1653_v60, 0.0  ;;  %v398_v29 = vadd.f32 %v393_v25, %v353_v27  ;;  %v602_v25 = vld [vmem:[%s1955_s5 + $0xd0] sm:$0xff] }
 0x15e   :  { %v1236_v26 = vpack.c.bf16 %v603_v1, %v602_v25 }
 0x15f   :  { %v435_v9 = vpop.permute.xlu1 %434  ;;  %v1320_v54 = vpack.i.bf16 %v499_v17, %v500_v18 }
 0x160   :  { %v478_v19 = vpop.permute.xlu0 %477  ;;  %v439_v32 = vsel %vm417_vm6, %v435_v9, %v437_v3  ;;  %v1220_v3 = vpack.c.bf16 %v595_v62, %v594_v51  ;;  %v608_v51 = vld [vmem:[%s1955_s5 + $0x100] sm:$0xff]  ;;  %v609_v62 = vld [vmem:[%s1955_s5 + $0x108] sm:$0x7] }
 0x161   :  { %1321 = vrot.lane.b32.xlu1 %v1320_v54, %s1375_s2  ;;  %v483_v37 = vsel %vm462_vm7, %v478_v19, %v480_v21  ;;  %v444_v33 = vadd.f32 %v439_v32, %v399_v34  ;;  %v584_v54 = vld [vmem:[%s1955_s5 + $0x40] sm:$0xff]  ;;  %v605_v19 = vld [vmem:[%s1955_s5 + $0xe8] sm:$0xff] }
 0x162   :  { %v1234_v27 = vpack.c.bf16 %v585_v24, %v584_v54  ;;  %v588_v32 = vld [vmem:[%s1955_s5 + $0x60] sm:$0xff]  ;;  %v1384_v54 = vmov 0.0  }
 0x163   :  { %v433_v30 = vpop.permute.xlu1 %432  ;;  %45 = vst [vmem:[#allocation2 + $0x38] sm:$0xff] %v1384_v54  ;;  %38 = vst [vmem:[#allocation2] sm:$0xff] %v1384_v54  ;;  %943 = vmatprep.mubr.f32.mxu1 %v1384_v54 }
 0x164   :  { %v438_v13 = vsel %vm417_vm6, %v433_v30, %v435_v9  ;;  %v601_v9 = vld [vmem:[%s1955_s5 + $0xc8] sm:$0xff]  ;;  %v1238_v30 = vpack.c.bf16 %v587_v20, %v586_v28  ;;  %39 = vst [vmem:[#allocation2 + $0x8] sm:$0xff] %v1384_v54  ;;  %40 = vst [vmem:[#allocation2 + $0x10] sm:$0xff] %v1384_v54 }
 0x165   :  { %v443_v35 = vadd.f32 %v438_v13, %v398_v29  ;;  %v1232_v63 = vpack.c.bf16 %v601_v9, %v600_v61  ;;  %v604_v29 = vld [vmem:[%s1955_s5 + $0xe0] sm:$0xff]  ;;  %v589_v13 = vld [vmem:[%s1955_s5 + $0x68] sm:$0xff]  ;;  %41 = vst [vmem:[#allocation2 + $0x18] sm:$0xff] %v1384_v54  ;;  %42 = vst [vmem:[#allocation2 + $0x20] sm:$0xff] %v1384_v54 }
 0x166   :  { %v1240_v4 = vpack.c.bf16 %v605_v19, %v604_v29  ;;  %43 = vst [vmem:[#allocation2 + $0x28] sm:$0xff] %v1384_v54  ;;  %44 = vst [vmem:[#allocation2 + $0x30] sm:$0xff] %v1384_v54 }
 0x167   :  { %v488_v7 = vadd.f32 %v483_v37, %v443_v35  ;;  %v482_v38 = vpop.permute.xlu1 %481  ;;  %v606_v37 = vld [vmem:[%s1955_s5 + $0xf0] sm:$0xff]  ;;  %46 = vst [vmem:[#allocation2 + $0x40] sm:$0xff] %v1384_v54  ;;  %47 = vst [vmem:[#allocation2 + $0x48] sm:$0xff] %v1384_v54 }
 0x168   :  { %v484_v39 = vsel %vm462_vm7, %v480_v21, %v482_v38  ;;  %v490_v40 = vadd.f32 %v482_v38, %v445_v36  ;;  %v599_v21 = vld [vmem:[%s1955_s5 + $0xb8] sm:$0xff]  ;;  %v1242_v36 = vpack.c.bf16 %v589_v13, %v588_v32  ;;  %48 = vst [vmem:[#allocation2 + $0x50] sm:$0xff] %v1384_v54  ;;  %49 = vst [vmem:[#allocation2 + $0x58] sm:$0xff] %v1384_v54 }
 0x169   :  { %v489_v41 = vadd.f32 %v484_v39, %v444_v33  ;;  %v1691_v42 = vadd.f32 %v1576_v31, %v488_v7  ;;  %v1228_v48 = vpack.c.bf16 %v599_v21, %v598_v16  ;;  %v607_v33 = vld [vmem:[%s1955_s5 + $0xf8] sm:$0xff]  ;;  %50 = vst [vmem:[#allocation2 + $0x60] sm:$0xff] %v1384_v54  ;;  %51 = vst [vmem:[#allocation2 + $0x68] sm:$0xff] %v1384_v54 }
 0x16a   :  { %v1694_v23 = vadd.f32 %v1576_v31, %v490_v40  ;;  %v591_v7 = vld [vmem:[%s1955_s5 + $0x78] sm:$0xff]  ;;  %52 = vst [vmem:[#allocation2 + $0x70] sm:$0xff] %v1384_v54  ;;  %53 = vst [vmem:[#allocation2 + $0x78] sm:$0xff] %v1384_v54 }
 0x16b   :  { %v1697_v44 = vadd.f32 %v1576_v31, %v489_v41  ;;  %v577_v31 = vld [vmem:[%s1955_s5 + $0x8] sm:$0xff]  ;;  %v505_v52 = vmax.f32 %v1691_v42, 0.0  ;;  %v1246_v38 = vpack.c.bf16 %v591_v7, %v590_v43  ;;  %54 = vst [vmem:[#allocation2 + $0x80] sm:$0xff] %v1384_v54  ;;  %55 = vst [vmem:[#allocation2 + $0x88] sm:$0xff] %v1384_v54  ;;  %s1385_s5 = smov 118  }
 0x16c   :  { %v507_v49 = vmax.f32 %v1694_v23, 0.0  ;;  %v1218_v2 = vpack.c.bf16 %v577_v31, %v576_v47 }
 0x16d   :  { %v506_v50 = vmax.f32 %v1697_v44, 0.0 }
 0x16e   :  { %549 = vrot.lane.b32.xlu0 %v507_v49, %s1375_s2  ;;  %1219 = vmatpush3.bf16.msra.mxu0 %v1218_v2  ;;  %v1248_v2 = vpack.c.bf16 %v609_v62, %v608_v51 }
 0x16f   :  { %v1325_v11 = vpack.i.bf16 %v505_v52, %v506_v50  ;;  %1221 = vmatprep.subr.bf16.mxu0 %v1220_v3 }
 0x171   :  { %1326 = vrot.lane.b32.xlu1 %v1325_v11, %s1375_s2 }
 0x172   :  { %1223 = vmatpush3.bf16.msra.mxu0 %v1222_v14 }
 0x173   :  { %1225 = vmatprep.subr.bf16.mxu0 %v1224_v15 }
 0x176   :  { %1227 = vmatpush3.bf16.msra.mxu0 %v1226_v55 }
 0x177   :  { %1229 = vmatprep.subr.bf16.mxu0 %v1228_v48 }
 0x17a   :  { %1231 = vmatpush3.bf16.msra.mxu0 %v1230_v22 }
 0x17b   :  { %1233 = vmatprep.subr.bf16.mxu0 %v1232_v63 }
 0x17e   :  { %1235 = vmatpush3.bf16.msra.mxu0 %v1234_v27 }
 0x17f   :  { %1237 = vmatprep.subr.bf16.mxu0 %v1236_v26 }
 0x182   :  { %1239 = vmatpush3.bf16.msra.mxu0 %v1238_v30  ;;  %v861_v30 = vld [vmem:[%s1954_s4 + $0x8] sm:$0xff] }
 0x183   :  { %1241 = vmatprep.subr.bf16.mxu0 %v1240_v4  ;;  %v860_v4 = vld [vmem:[%s1954_s4] sm:$0xff] }
 0x186   :  { %1243 = vmatpush3.bf16.msra.mxu0 %v1242_v36 }
 0x1c9   :  { %v516_v34 = vpop.permute.xlu0 %515 }
 0x1ca   :  { %v1796_v35 = vmax.f32 %v501_v57, %v516_v34  ;;  %v1244_v57 = vpack.c.bf16 %v607_v33, %v606_v37 }
 0x1cc   :  { %532 = vrot.lane.b32.xlu0 %v1796_v35, %s1377_s16  ;;  %1245 = vmatprep.subr.bf16.mxu0 %v1244_v57 }
 0x1cd   :  { %1247 = vmatpush3.bf16.msra.mxu0 %v1246_v38 }
 0x1ce   :  { %1250 = vmatprep.subr.msk.bf16.mxu0 %vm1826_vm10, %v1248_v2 }
 0x1d3   :  { %v1322_v39 = vpop.permute.xlu1 %1321 }
 0x1d4   :  { %v1324_v40 = vunpack.i.h.bf16 %v1322_v39  ;;  %v1323_v41 = vunpack.i.l.bf16 %v1322_v39 }
 0x1d6   :  { %v517_v45 = vsel %vm147_vm0, %v1324_v40, %v1323_v41  ;;  %v518_v53 = vsel %vm147_vm0, %v1323_v41, %v516_v34 }
 0x1d7   :  { %v522_v47 = vmax.f32 %v499_v17, %v517_v45  ;;  %v523_v58 = vmax.f32 %v500_v18, %v518_v53 }
 0x1d9   :  { %v1330_v31 = vpack.i.bf16 %v522_v47, %v523_v58 }
 0x1db   :  { %1331 = vrot.lane.b32.xlu1 %v1330_v31, %s1377_s16 }
 0x1e0   :  { %v550_v60 = vpop.permute.xlu0 %549 }
 0x1e1   :  { %v558_v17 = vmax.f32 %v507_v49, %v550_v60 }
 0x1e3   :  { %566 = vrot.lane.b32.xlu0 %v558_v17, %s1377_s16  ;;  %v1327_v18 = vpop.permute.xlu1 %1326 }
 0x1e4   :  { %v1329_v3 = vunpack.i.h.bf16 %v1327_v18  ;;  %v1328_v5 = vunpack.i.l.bf16 %v1327_v18 }
 0x1e6   :  { %v551_v6 = vsel %vm147_vm0, %v1329_v3, %v1328_v5  ;;  %v552_v8 = vsel %vm147_vm0, %v1328_v5, %v550_v60 }
 0x1e7   :  { %v556_v10 = vmax.f32 %v505_v52, %v551_v6  ;;  %v557_v11 = vmax.f32 %v506_v50, %v552_v8 }
 0x1e9   :  { %v1335_v23 = vpack.i.bf16 %v556_v10, %v557_v11 }
 0x1eb   :  { %1336 = vrot.lane.b32.xlu1 %v1335_v23, %s1377_s16  ;;  %s1386_s16 = smov 116  }
 0x23e   :  { %v533_v56 = vpop.permute.xlu0 %532 }
 0x23f   :  { %v541_v22 = vmax.f32 %v1796_v35, %v533_v56 }
 0x24d   :  { %v1332_v49 = vpop.permute.xlu1 %1331 }
 0x24e   :  { %v1334_v14 = vunpack.i.h.bf16 %v1332_v49  ;;  %v1333_v15 = vunpack.i.l.bf16 %v1332_v49 }
 0x250   :  { %v535_v0 = vsel %vm237_vm2, %v1333_v15, %v533_v56  ;;  %v534_v55 = vsel %vm237_vm2, %v1334_v14, %v1333_v15 }
 0x251   :  { %v540_v16 = vmax.f32 %v523_v58, %v535_v0  ;;  %v539_v21 = vmax.f32 %v522_v47, %v534_v55 }
 0x253   :  { %685 = vmatprep.mubr.f32.mxu0 %v540_v16 }
 0x254   :  { %686 = vmatmul.mubr.f32.vlgmr.msra.gmra.mrb[0].mxu0 %v539_v21 }
 0x255   :  { %1253 = vmatpush3.bf16.msk.msra.mxu0 %vm1826_vm10, %v1248_v2  ;;  %v567_v52 = vpop.permute.xlu0 %566 }
 0x256   :  { %v575_v9 = vmax.f32 %v558_v17, %v567_v52 }
 0x25d   :  { %v1337_v42 = vpop.permute.xlu1 %1336 }
 0x25e   :  { %v1339_v44 = vunpack.i.h.bf16 %v1337_v42  ;;  %v1338_v50 = vunpack.i.l.bf16 %v1337_v42  ;;  %v840_v42 = vld [vmem:[%s1953_s3] sm:$0xff] }
 0x260   :  { %v569_v48 = vsel %vm237_vm2, %v1338_v50, %v567_v52  ;;  %v568_v46 = vsel %vm237_vm2, %v1339_v44, %v1338_v50  ;;  %v841_v50 = vld [vmem:[%s1953_s3 + $0x8] sm:$0xff] }
 0x261   :  { %v574_v59 = vmax.f32 %v557_v11, %v569_v48  ;;  %v573_v61 = vmax.f32 %v556_v10, %v568_v46 }
 0x263   :  { %690 = vmatprep.mubr.f32.mxu0 %v574_v59 }
 0x264   :  { %691 = vmatmul.mubr.f32.gmra.mrb[2].mxu0 %v573_v61  ;;  %v1000_v61 = vld [vmem:[%s1956_s6] sm:$0xff] }
 0x265   :  { %1189 = vmatprep.mubr.msk.f32.mxu0 %vm610_vm11, %v541_v22  ;;  %v1001_v22 = vld [vmem:[%s1956_s6 + $0x8] sm:$0xff] }
 0x268   :  { %1190 = vmatmul.mubr.msk.f32.vlgmr.msra.gmra.mrb[4].mxu0 %vm610_vm11, %v575_v9  ;;  %v1002_v9 = vld [vmem:[%s1956_s6 + $0x10] sm:$0xff] }
 0x327   :  { %v1162_v24 = vpop.f32.mrb[0].mxu0 }
 0x328   :  { %v1163_v63 = vpop.f32.mrb[1].mxu0 }
 0x329   :  { %v1164_v25 = vadd.f32 %v1163_v63, %v1162_v24  ;;  %v1270_v63 = vpack.c.bf16 %v1001_v22, %v1000_v61 }
 0x337   :  { %v1165_v1 = vpop.f32.mrb[2].mxu0 }
 0x338   :  { %v1166_v27 = vpop.f32.mrb[3].mxu0 }
 0x339   :  { %v1167_v26 = vadd.f32 %v1166_v27, %v1165_v1 }
 0x33b   :  { %v1191_v28 = vpop.f32.mrb[4].mxu0 }
 0x33c   :  { %v768_v20 = vadd.f32 %v1191_v28, %v1167_v26  ;;  %v762_v29 = vpop.f32.mrb[5].mxu0  ;;  %v1004_v28 = vld [vmem:[%s1956_s6 + $0x20] sm:$0xff] }
 0x33d   :  { %v763_v19 = vadd.f32 %v1164_v25, %v762_v29  ;;  %v1003_v25 = vld [vmem:[%s1956_s6 + $0x18] sm:$0xff] }
 0x33e   :  { %796 = vrot.lane.b32.xlu0 %v768_v20, %s1385_s5  ;;  %780 = vrot.lane.b32.xlu1 %v768_v20, %s1375_s2  ;;  %773 = vst.msk [vmem:[#allocation2 + $0x8] sm:$0xff] %vm771_vm12, %v768_v20  ;;  %v1274_v26 = vpack.c.bf16 %v1003_v25, %v1002_v9 }
 0x33f   :  { %772 = vst.msk [vmem:[#allocation2] sm:$0xff] %vm771_vm12, %v763_v19 }
 0x342   :  { %812 = vrot.lane.b32.xlu0 %v768_v20, %s1386_s16  ;;  %788 = vrot.lane.b32.xlu1 %v768_v20, %s1376_s0 }
 0x345   :  { %v843_v33 = vld [vmem:[#allocation2 + $0x8] sm:$0xff] }
 0x346   :  { %828 = vrot.lane.b32.xlu0 %v768_v20, %s1387_s24  ;;  %804 = vrot.lane.b32.xlu1 %v768_v20, %s1388_s25  ;;  %v842_v47 = vld [vmem:[#allocation2] sm:$0xff] }
 0x34a   :  { %820 = vrot.lane.b32.xlu1 %v768_v20, %s1379_s18  ;;  %775 = vrot.lane.b32.xlu0 %v763_v19, %s1375_s2 }
 0x34e   :  { %784 = vrot.lane.b32.xlu1 %v763_v19, %s1376_s0  ;;  %792 = vrot.lane.b32.xlu0 %v763_v19, %s1385_s5 }
 0x352   :  { %800 = vrot.lane.b32.xlu1 %v763_v19, %s1388_s25  ;;  %808 = vrot.lane.b32.xlu0 %v763_v19, %s1386_s16 }
 0x356   :  { %816 = vrot.lane.b32.xlu1 %v763_v19, %s1379_s18  ;;  %824 = vrot.lane.b32.xlu0 %v763_v19, %s1387_s24 }
 0x35a   :  { %836 = vrot.lane.b32.xlu1 %v768_v20, %s1389_s26  ;;  %832 = vrot.lane.b32.xlu0 %v763_v19, %s1389_s26  ;;  %v1005_v20 = vld [vmem:[%s1956_s6 + $0x28] sm:$0xff] }
 0x35e   :  { %869 = vperm.xlu0 %1319, %v861_v30   ;;  %864 = vperm.xlu1 %1340, %v860_v4  }
 0x3b0   :  { %v797_v32 = vpop.permute.xlu0 %796  ;;  %v781_v13 = vpop.permute.xlu1 %780 }
 0x3b1   :  { %799 = vst.msk [vmem:[#allocation2 + $0x38] sm:$0xff] %vm771_vm12, %v797_v32  ;;  %783 = vst.msk [vmem:[#allocation2 + $0x18] sm:$0xff] %vm771_vm12, %v781_v13  ;;  %v1278_v13 = vpack.c.bf16 %v1005_v20, %v1004_v28 }
 0x3b4   :  { %v813_v34 = vpop.permute.xlu0 %812  ;;  %v789_v35 = vpop.permute.xlu1 %788 }
 0x3b5   :  { %815 = vst.msk [vmem:[#allocation2 + $0x58] sm:$0xff] %vm771_vm12, %v813_v34  ;;  %791 = vst.msk [vmem:[#allocation2 + $0x28] sm:$0xff] %vm771_vm12, %v789_v35  ;;  %v1006_v35 = vld [vmem:[%s1956_s6 + $0x30] sm:$0xff] }
 0x3b8   :  { %v829_v36 = vpop.permute.xlu0 %828  ;;  %v805_v37 = vpop.permute.xlu1 %804  ;;  %v845_v43 = vld [vmem:[#allocation2 + $0x18] sm:$0xff] }
 0x3b9   :  { %831 = vst.msk [vmem:[#allocation2 + $0x78] sm:$0xff] %vm771_vm12, %v829_v36  ;;  %807 = vst.msk [vmem:[#allocation2 + $0x48] sm:$0xff] %vm771_vm12, %v805_v37  ;;  %v1254_v57 = vpack.c.bf16 %v845_v43, %v843_v33  ;;  %v849_v51 = vld [vmem:[#allocation2 + $0x38] sm:$0xff]  ;;  %v1008_v33 = vld [vmem:[%s1956_s6 + $0x40] sm:$0x7] }
 0x3ba   :  { %v1007_v36 = vld [vmem:[%s1956_s6 + $0x38] sm:$0xff] }
 0x3bb   :  { %1255 = vmatprep.subr.bf16.mxu1 %v1254_v57  ;;  %v1282_v37 = vpack.c.bf16 %v1007_v36, %v1006_v35 }
 0x3bc   :  { %v821_v7 = vpop.permute.xlu1 %820  ;;  %v776_v38 = vpop.permute.xlu0 %775  ;;  %v847_v41 = vld [vmem:[#allocation2 + $0x28] sm:$0xff]  ;;  %v853_v5 = vld [vmem:[#allocation2 + $0x58] sm:$0xff] }
 0x3bd   :  { %823 = vst.msk [vmem:[#allocation2 + $0x68] sm:$0xff] %vm771_vm12, %v821_v7  ;;  %778 = vst.msk [vmem:[#allocation2 + $0x10] sm:$0xff] %vm771_vm12, %v776_v38  ;;  %v1258_v62 = vpack.c.bf16 %v849_v51, %v847_v41 }
 0x3c0   :  { %v785_v39 = vpop.permute.xlu1 %784  ;;  %v793_v40 = vpop.permute.xlu0 %792  ;;  %v851_v2 = vld [vmem:[#allocation2 + $0x48] sm:$0xff]  ;;  %v857_v15 = vld [vmem:[#allocation2 + $0x78] sm:$0xff] }
 0x3c1   :  { %787 = vst.msk [vmem:[#allocation2 + $0x20] sm:$0xff] %vm771_vm12, %v785_v39  ;;  %795 = vst.msk [vmem:[#allocation2 + $0x30] sm:$0xff] %vm771_vm12, %v793_v40  ;;  %v1262_v6 = vpack.c.bf16 %v853_v5, %v851_v2 }
 0x3c4   :  { %v801_v45 = vpop.permute.xlu1 %800  ;;  %v809_v53 = vpop.permute.xlu0 %808  ;;  %v844_v58 = vld [vmem:[#allocation2 + $0x10] sm:$0xff]  ;;  %v855_v8 = vld [vmem:[#allocation2 + $0x68] sm:$0xff] }
 0x3c5   :  { %803 = vst.msk [vmem:[#allocation2 + $0x40] sm:$0xff] %vm771_vm12, %v801_v45  ;;  %811 = vst.msk [vmem:[#allocation2 + $0x50] sm:$0xff] %vm771_vm12, %v809_v53  ;;  %v1256_v31 = vpack.c.bf16 %v844_v58, %v842_v47  ;;  %v1266_v56 = vpack.c.bf16 %v857_v15, %v855_v8 }
 0x3c7   :  { %1257 = vmatpush1.bf16.msra.mxu1 %v1256_v31 }
 0x3c8   :  { %v817_v12 = vpop.permute.xlu1 %816  ;;  %v825_v60 = vpop.permute.xlu0 %824  ;;  %1259 = vmatprep.subr.bf16.mxu1 %v1258_v62  ;;  %v846_v17 = vld [vmem:[#allocation2 + $0x20] sm:$0xff]  ;;  %v848_v18 = vld [vmem:[#allocation2 + $0x30] sm:$0xff] }
 0x3c9   :  { %819 = vst.msk [vmem:[#allocation2 + $0x60] sm:$0xff] %vm771_vm12, %v817_v12  ;;  %827 = vst.msk [vmem:[#allocation2 + $0x70] sm:$0xff] %vm771_vm12, %v825_v60  ;;  %v1260_v3 = vpack.c.bf16 %v848_v18, %v846_v17 }
 0x3cb   :  { %1261 = vmatpush1.bf16.msra.mxu1 %v1260_v3 }
 0x3cc   :  { %v837_v10 = vpop.permute.xlu1 %836  ;;  %v833_v11 = vpop.permute.xlu0 %832  ;;  %1263 = vmatprep.subr.bf16.mxu1 %v1262_v6  ;;  %v850_v23 = vld [vmem:[#allocation2 + $0x40] sm:$0xff]  ;;  %v852_v49 = vld [vmem:[#allocation2 + $0x50] sm:$0xff] }
 0x3cd   :  { %839 = vst.msk [vmem:[#allocation2 + $0x88] sm:$0xff] %vm771_vm12, %v837_v10  ;;  %835 = vst.msk [vmem:[#allocation2 + $0x80] sm:$0xff] %vm771_vm12, %v833_v11  ;;  %v1264_v14 = vpack.c.bf16 %v852_v49, %v850_v23 }
 0x3cf   :  { %1265 = vmatpush1.bf16.msra.mxu1 %v1264_v14 }
 0x3d0   :  { %1267 = vmatprep.subr.bf16.mxu1 %v1266_v56  ;;  %v854_v0 = vld [vmem:[#allocation2 + $0x60] sm:$0xff]  ;;  %v856_v55 = vld [vmem:[#allocation2 + $0x70] sm:$0xff] }
 0x3d1   :  { %v1268_v16 = vpack.c.bf16 %v856_v55, %v854_v0 }
 0x3d3   :  { %1269 = vmatpush1.bf16.msra.mxu1 %v1268_v16 }
 0x3d4   :  { %v859_v21 = vld [vmem:[#allocation2 + $0x88] sm:$0xff]  ;;  %v858_v44 = vld [vmem:[#allocation2 + $0x80] sm:$0xff] }
 0x3d5   :  { %895 = vmatprep.subr.mxu1 %v859_v21 }
 0x3d7   :  { %896 = vmatpush1.msra.mxu1 %v858_v44 }
 0x3d8   :  { %1123 = vmatmul.mubr.msk.f32.vlgmr.msra.gmra.mrb[0].mxu1 %vm872_vm13, %v840_v42  ;;  %1271 = vmatprep.subr.bf16.mxu1 %v1270_v63 }
 0x3d9   :  { %949 = vmatprep.mubr.f32.mxu1 %v1384_v54  ;;  %1273 = vmatpush3.bf16.msra.mxu1 %v1270_v63 }
 0x3da   :  { %1275 = vmatprep.subr.bf16.mxu1 %v1274_v26 }
 0x3dc   :  { %1124 = vmatmul.mubr.msk.f32.gmra.mrb[2].mxu1 %vm872_vm13, %v841_v50 }
 0x3dd   :  { %v865_v52 = vpop.permute.xlu1 %864  ;;  %v870_v1 = vpop.permute.xlu0 %869  ;;  %1277 = vmatpush3.bf16.msra.mxu1 %v1274_v26 }
 0x3de   :  { %1279 = vmatprep.subr.bf16.mxu1 %v1278_v13 }
 0x3e1   :  { %1281 = vmatpush3.bf16.msra.mxu1 %v1278_v13 }
 0x3e2   :  { %1283 = vmatprep.subr.bf16.mxu1 %v1282_v37 }
 0x3e5   :  { %1285 = vmatpush3.bf16.msra.mxu1 %v1282_v37 }
 0x3e6   :  { %1208 = vmatprep.subr.msk.mxu1 %vm617_vm8, %v1008_v33 }
 0x3e9   :  { %1209 = vmatpush3.msk.msra.mxu1 %vm617_vm8, %v1008_v33 }
 0x4ab   :  { %v945_v48 = vpop.f32.mrb[0].mxu1 }
 0x4ac   :  { %v946_v46 = vadd.f32 %v945_v48, %v865_v52  ;;  %v947_v59 = vpop.f32.mrb[1].mxu1 }
 0x4ad   :  { %v948_v24 = vadd.f32 %v947_v59, %v865_v52 }
 0x4ae   :  { %v956_v54 = vmax.f32 %v946_v46, 0.0 }
 0x4af   :  { %v951_v27 = vpop.f32.mrb[2].mxu1  ;;  %v957_v30 = vmax.f32 %v948_v24, 0.0 }
 0x4b0   :  { %v952_v29 = vadd.f32 %v951_v27, %v870_v1  ;;  %v953_v19 = vpop.f32.mrb[3].mxu1  ;;  %962 = vrot.lane.b32.xlu1 %v956_v54, %s1375_s2 }
 0x4b1   :  { %v954_v32 = vadd.f32 %v953_v19, %v870_v1 }
 0x4b2   :  { %v958_v4 = vmax.f32 %v952_v29, 0.0 }
 0x4b3   :  { %v959_v34 = vmax.f32 %v954_v32, 0.0 }
 0x4b4   :  { %964 = vrot.lane.b32.xlu0 %v958_v4, %s1375_s2  ;;  %982 = vrot.lane.b32.xlu1 %v957_v30, %s1375_s2 }
 0x4b8   :  { %984 = vrot.lane.b32.xlu0 %v959_v34, %s1375_s2 }
 0x522   :  { %v963_v43 = vpop.permute.xlu1 %962 }
 0x523   :  { %v968_v57 = vmax.f32 %v956_v54, %v963_v43 }
 0x525   :  { %972 = vrot.lane.b32.xlu1 %v968_v57, %s1385_s5 }
 0x526   :  { %v965_v7 = vpop.permute.xlu0 %964  ;;  %v983_v38 = vpop.permute.xlu1 %982 }
 0x527   :  { %v969_v39 = vmax.f32 %v958_v4, %v965_v7  ;;  %v988_v40 = vmax.f32 %v957_v30, %v983_v38 }
 0x529   :  { %974 = vrot.lane.b32.xlu0 %v969_v39, %s1385_s5  ;;  %992 = vrot.lane.b32.xlu1 %v988_v40, %s1385_s5 }
 0x52a   :  { %v985_v41 = vpop.permute.xlu0 %984 }
 0x52b   :  { %v989_v45 = vmax.f32 %v959_v34, %v985_v41 }
 0x52d   :  { %994 = vrot.lane.b32.xlu0 %v989_v45, %s1385_s5 }
 0x597   :  { %v973_v53 = vpop.permute.xlu1 %972 }
 0x598   :  { %v978_v47 = vmax.f32 %v968_v57, %v973_v53 }
 0x59a   :  { %1210 = vmatprep.mubr.msk.f32.mxu1 %vm1009_vm14, %v978_v47 }
 0x59b   :  { %v975_v58 = vpop.permute.xlu0 %974  ;;  %v993_v31 = vpop.permute.xlu1 %992 }
 0x59c   :  { %v979_v51 = vmax.f32 %v969_v39, %v975_v58  ;;  %v998_v62 = vmax.f32 %v988_v40, %v993_v31 }
 0x59e   :  { %1211 = vmatmul.mubr.msk.f32.vlgmr.msra.gmra.mrb[4].mxu1 %vm1009_vm14, %v979_v51 }
 0x59f   :  { %v995_v2 = vpop.permute.xlu0 %994  ;;  %1213 = vmatprep.mubr.msk.f32.mxu1 %vm1009_vm14, %v998_v62 }
 0x5a0   :  { %v999_v12 = vmax.f32 %v989_v45, %v995_v2 }
 0x5a2   :  { %1214 = vmatmul.mubr.msk.f32.gmra.mrb[6].mxu1 %vm1009_vm14, %v999_v12 }
 0x671   :  { %v1212_v60 = vpop.f32.mrb[4].mxu1 }
 0x672   :  { %v1091_v17 = vpop.f32.mrb[5].mxu1 }
 0x675   :  { %v1215_v18 = vpop.f32.mrb[6].mxu1 }
 0x676   :  { %v1111_v3 = vsub.f32 %v1212_v60, %v1215_v18  ;;  %v1101_v5 = vpop.f32.mrb[7].mxu1 }
 0x677   :  { %v1110_v6 = vsub.f32 %v1091_v17, %v1101_v5 }
 0x678   :  { %1114 = vst.msk [vmem:[%s1957_s7 + $0x8] sm:$0xff] %vm1112_vm15, %v1111_v3 }
 0x679   :  { %1113 = vst.msk [vmem:[%s1957_s7] sm:$0xff] %vm1112_vm15, %v1110_v6 }
 0x67a   :  { %1119 = vsyncpa [#allocation4], 1 }

</bundles_post_ra>
